<compile_context>
chip_gen: v5e
topology: v5e:2x2
jax: 0.10.0
libtpu: 0.0.40
codegen_flags: <defaults>
</compile_context>

<pallas_src>
import jax
import jax.numpy as jnp
import numpy as np
from jax.experimental import pallas as pl
from jax.experimental.pallas import tpu as pltpu

# ---- Problem configuration (module defaults) ----
BATCH = 2
INPUT_DIM = 32
OUTPUT_DIM = 32
HEADS = 8
DIM_HEAD = 16
INNER_DIM = HEADS * DIM_HEAD                        # 128
SCALE = DIM_HEAD ** (-0.5)                          # 0.25 (power of two -> exact fold)

OUT_PAD = 128                                       # lane-dense padded output width
PROJ_DIM = INNER_DIM + 2 * DIM_HEAD * INNER_DIM     # 128 + 2*2048 = 4224
MAX_TILE_B = 256


def _cdiv(a, b):
    return -(-a // b)


def _round_up(x, m):
    return ((x + m - 1) // m) * m


def attention_kernel(x_ref, wproj_ref, wout_ref, bout_ref, o_ref):
    # x_ref:     (T, INPUT_DIM)
    # wproj_ref: (INPUT_DIM, PROJ_DIM)  [scaled-q | head-expanded k | head-expanded v]
    # wout_ref:  (INNER_DIM, OUT_PAD)   transposed + lane-padded to_out weight
    # bout_ref:  (1, OUT_PAD)           lane-padded to_out bias
    # o_ref:     (T, OUT_PAD)
    x = x_ref[...]
    T = x.shape[0]

    # ---- single fused projection (MXU): q*scale, expanded-k, expanded-v ----
    proj = jnp.dot(x, wproj_ref[...], preferred_element_type=jnp.float32)   # (T, 4224)
    q = proj[:, :INNER_DIM]                                                 # (T, 128)
    kv_sz = DIM_HEAD * INNER_DIM                                            # 2048
    kg = proj[:, INNER_DIM:INNER_DIM + kv_sz].reshape(T, DIM_HEAD, INNER_DIM)
    vg = proj[:, INNER_DIM + kv_sz:].reshape(T, DIM_HEAD, INNER_DIM)
    # kg[b, j, h*16+i] == k[b, h*16+j]; vg likewise (expansion baked into W_proj).

    # ---- per-head similarity: key-dim j on sublanes, (head, query-dim) on lanes ----
    sim = kg * q[:, None, :]                                                # (T, 16, 128)

    # Softmax over j (axis 1): 16-deep sublane reductions, no masking needed.
    m = jnp.max(sim, axis=1, keepdims=True)                                 # (T, 1, 128)
    p = jnp.exp(sim - m)                                                    # (T, 16, 128)
    den = jnp.sum(p, axis=1)                                                # (T, 128)
    num = jnp.sum(p * vg, axis=1)                                           # (T, 128)

    # Normalize after the reduction; exact reciprocal (approx would eat tolerance).
    attn_out = num * pl.reciprocal(den, approx=False)                       # (T, 128)

    # ---- to_out projection (MXU) + bias, lane-dense padded store ----
    y = jnp.dot(attn_out, wout_ref[...], preferred_element_type=jnp.float32)
    o_ref[...] = (y + bout_ref[...]).astype(o_ref.dtype)


def _build_kernel_weights(wqkv_t, wout_t, bout):
    """Host-side one-time weight preprocessing.

    * Fold the softmax scale into the q columns (0.25 -> bit-exact).
    * Fold the per-head expansion of k and v into a column gather of W_qkv so the
      kernel's single projection matmul directly yields kg/vg with the key-dim on
      its own (sublane) axis: no in-kernel transpose/repeat/one-hot matmul.
    * Zero-pad the output projection to 128 lanes for an unmasked lane-dense store.
    """
    wq = wqkv_t[:, 0 * INNER_DIM:1 * INNER_DIM] * SCALE
    wk = wqkv_t[:, 1 * INNER_DIM:2 * INNER_DIM]
    wv = wqkv_t[:, 2 * INNER_DIM:3 * INNER_DIM]

    # Column index for the head expansion: target column (j, a) with a = h*16+i
    # reads source column h*16 + j.
    a = np.arange(INNER_DIM)
    j = np.arange(DIM_HEAD)
    idx = (DIM_HEAD * (a[None, :] // DIM_HEAD) + j[:, None]).reshape(-1)    # (2048,)
    wk_exp = wk[:, idx]                                                     # (32, 2048)
    wv_exp = wv[:, idx]                                                     # (32, 2048)

    wproj = jnp.concatenate([wq, wk_exp, wv_exp], axis=1)                   # (32, 4224)
    wout_p = jnp.pad(wout_t, ((0, 0), (0, OUT_PAD - OUTPUT_DIM)))           # (128, 128)
    bout_p = jnp.pad(bout.reshape(1, -1), ((0, 0), (0, OUT_PAD - OUTPUT_DIM)))
    return wproj, wout_p, bout_p


def attention_pallas(x, wqkv_t, wout_t, bout):
    B = x.shape[0]

    # Batch tiling: cap at MAX_TILE_B rows, and aim for >=2 grid steps whenever
    # B > 8 so the "parallel" batch axis actually uses both TensorCores on v7x.
    tile_b = max(8, min(MAX_TILE_B, _round_up(_cdiv(B, 2), 8)))
    b_pad = _round_up(B, tile_b)
    if b_pad != B:
        x = jnp.pad(x, ((0, b_pad - B), (0, 0)))   # zero rows: den = 16, no NaNs

    wproj, wout_p, bout_p = _build_kernel_weights(wqkv_t, wout_t, bout)

    grid = (b_pad // tile_b,)

    cost = pl.CostEstimate(
        flops=2 * b_pad * (INPUT_DIM * PROJ_DIM + INNER_DIM * OUT_PAD),
        transcendentals=b_pad * DIM_HEAD * INNER_DIM,
        bytes_accessed=4 * (b_pad * INPUT_DIM + INPUT_DIM * PROJ_DIM
                            + INNER_DIM * OUT_PAD + OUT_PAD + b_pad * OUT_PAD),
    )

    out = pl.pallas_call(
        attention_kernel,
        out_shape=jax.ShapeDtypeStruct((b_pad, OUT_PAD), jnp.float32),
        grid=grid,
        in_specs=[
            pl.BlockSpec((tile_b, INPUT_DIM), lambda i: (i, 0)),
            # Weights / bias: grid-invariant index maps -> fetched once, VMEM resident.
            pl.BlockSpec((INPUT_DIM, PROJ_DIM), lambda i: (0, 0)),
            pl.BlockSpec((INNER_DIM, OUT_PAD), lambda i: (0, 0)),
            pl.BlockSpec((1, OUT_PAD), lambda i: (0, 0)),
        ],
        out_specs=pl.BlockSpec((tile_b, OUT_PAD), lambda i: (i, 0)),
        compiler_params=pltpu.CompilerParams(
            dimension_semantics=("parallel",),        # batch sharded over TCs (v7x)
            vmem_limit_bytes=32 * 1024 * 1024,        # raises v5e's 16 MiB default
        ),
        cost_estimate=cost,
    )(x, wproj, wout_p, bout_p)

    return out[:B, :OUTPUT_DIM]


def attention_reference(x, wqkv_t, wout_t, bout):
    """Pure-JAX mirror of the PyTorch forward (explicit per-head reshape)."""
    B = x.shape[0]
    qkv = x @ wqkv_t                                           # (B, 3I)
    q, k, v = jnp.split(qkv, 3, axis=-1)                       # each (B, I)
    qh = q.reshape(B, HEADS, DIM_HEAD)
    kh = k.reshape(B, HEADS, DIM_HEAD)
    vh = v.reshape(B, HEADS, DIM_HEAD)
    sim = qh[:, :, :, None] * kh[:, :, None, :] * SCALE        # (B, h, i, j)
    attn = jax.nn.softmax(sim, axis=-1)
    out = jnp.sum(attn * vh[:, :, None, :], axis=-1)           # (B, h, i)
    out = out.reshape(B, INNER_DIM)
    return out @ wout_t + bout.reshape(1, -1)                  # (B, OUTPUT_DIM)


if __name__ == "__main__":
    key = jax.random.PRNGKey(0)
    kx, kqkv, kout, kb = jax.random.split(key, 4)

    x = jax.random.normal(kx, (BATCH, INPUT_DIM), dtype=jnp.float32)
    # nn.Linear weight is (out_features, in_features); keep it transposed for x @ W.
    wqkv_t = jax.random.normal(kqkv, (INPUT_DIM, 3 * INNER_DIM), dtype=jnp.float32) \
        * (INPUT_DIM ** -0.5)
    wout_t = jax.random.normal(kout, (INNER_DIM, OUTPUT_DIM), dtype=jnp.float32) \
        * (INNER_DIM ** -0.5)
    bout = jax.random.normal(kb, (1, OUTPUT_DIM), dtype=jnp.float32) * 0.01

    out = attention_pallas(x, wqkv_t, wout_t, bout)
    out = jax.block_until_ready(out)

    ref = attention_reference(x, wqkv_t, wout_t, bout)
    np.testing.assert_allclose(np.asarray(out), np.asarray(ref), rtol=1e-4, atol=1e-4)

    print("KERNEL_OK")
</pallas_src>

<mosaic_0001>
module attributes {stable_mosaic.version = 11 : i64} {
  func.func @attention_kernel(%arg0: i32, %arg1: memref<8x32xf32, #tpu.memory_space<vmem>>, %arg2: memref<32x4224xf32, #tpu.memory_space<vmem>>, %arg3: memref<128x128xf32, #tpu.memory_space<vmem>>, %arg4: memref<1x128xf32, #tpu.memory_space<vmem>>, %arg5: memref<8x128xf32, #tpu.memory_space<vmem>>) attributes {dimension_semantics = [#tpu.dimension_semantics<parallel>], iteration_bounds = array<i64: 1>, scalar_prefetch = 0 : i64, scratch_operands = 0 : i64, tpu.core_type = #tpu.core_type<tc>, window_params = [{transform_indices = @transform_0, window_bounds = array<i64: 8, 32>}, {pipeline_mode = #tpu.pipeline_mode<synchronous>, transform_indices = @transform_1, window_bounds = array<i64: 32, 4224>}, {pipeline_mode = #tpu.pipeline_mode<synchronous>, transform_indices = @transform_2, window_bounds = array<i64: 128, 128>}, {pipeline_mode = #tpu.pipeline_mode<synchronous>, transform_indices = @transform_3, window_bounds = array<i64: 1, 128>}, {transform_indices = @transform_4, window_bounds = array<i64: 8, 128>}]} {
    %c0 = arith.constant 0 : index
    %c0_0 = arith.constant 0 : index
    %0 = vector.load %arg1[%c0, %c0_0] : memref<8x32xf32, #tpu.memory_space<vmem>>, vector<8x32xf32>
    %c0_1 = arith.constant 0 : index
    %c0_2 = arith.constant 0 : index
    %1 = vector.load %arg2[%c0_1, %c0_2] : memref<32x4224xf32, #tpu.memory_space<vmem>>, vector<32x4224xf32>
    %cst = arith.constant dense<0.000000e+00> : vector<8x4224xf32>
    %2 = tpu.matmul %0, %1, %cst {dimension_numbers = #tpu.dot_dimension_numbers<[1], [0], [0], [1], [0, 0, 1, 1], [], []>} : vector<8x32xf32>, vector<32x4224xf32>, vector<8x4224xf32> -> vector<8x4224xf32>
    %3 = vector.extract_strided_slice %2 {offsets = [0, 0], sizes = [8, 128], strides = [1, 1]} : vector<8x4224xf32> to vector<8x128xf32>
    %4 = vector.extract_strided_slice %2 {offsets = [0, 128], sizes = [8, 2048], strides = [1, 1]} : vector<8x4224xf32> to vector<8x2048xf32>
    %5 = vector.shape_cast %4 : vector<8x2048xf32> to vector<8x16x128xf32>
    %6 = vector.extract_strided_slice %2 {offsets = [0, 2176], sizes = [8, 2048], strides = [1, 1]} : vector<8x4224xf32> to vector<8x2048xf32>
    %7 = vector.shape_cast %6 : vector<8x2048xf32> to vector<8x16x128xf32>
    %8 = vector.shape_cast %3 : vector<8x128xf32> to vector<8x1x128xf32>
    %9 = vector.broadcast %8 : vector<8x1x128xf32> to vector<8x16x128xf32>
    %10 = arith.mulf %5, %9 : vector<8x16x128xf32>
    %cst_3 = arith.constant dense<0xFF800000> : vector<8x128xf32>
    %11 = vector.multi_reduction <maximumf>, %10, %cst_3 [1] : vector<8x16x128xf32> to vector<8x128xf32>
    %12 = vector.shape_cast %11 : vector<8x128xf32> to vector<8x1x128xf32>
    %13 = vector.broadcast %12 : vector<8x1x128xf32> to vector<8x16x128xf32>
    %14 = arith.subf %10, %13 : vector<8x16x128xf32>
    %15 = math.exp %14 : vector<8x16x128xf32>
    %cst_4 = arith.constant dense<0.000000e+00> : vector<8x128xf32>
    %16 = vector.multi_reduction <add>, %15, %cst_4 [1] : vector<8x16x128xf32> to vector<8x128xf32>
    %17 = arith.mulf %15, %7 : vector<8x16x128xf32>
    %cst_5 = arith.constant dense<0.000000e+00> : vector<8x128xf32>
    %18 = vector.multi_reduction <add>, %17, %cst_5 [1] : vector<8x16x128xf32> to vector<8x128xf32>
    %19 = tpu.reciprocal %16 : vector<8x128xf32> -> vector<8x128xf32>
    %20 = arith.mulf %18, %19 : vector<8x128xf32>
    %c0_6 = arith.constant 0 : index
    %c0_7 = arith.constant 0 : index
    %21 = vector.load %arg3[%c0_6, %c0_7] : memref<128x128xf32, #tpu.memory_space<vmem>>, vector<128x128xf32>
    %cst_8 = arith.constant dense<0.000000e+00> : vector<8x128xf32>
    %22 = tpu.matmul %20, %21, %cst_8 {dimension_numbers = #tpu.dot_dimension_numbers<[1], [0], [0], [1], [0, 0, 1, 1], [], []>} : vector<8x128xf32>, vector<128x128xf32>, vector<8x128xf32> -> vector<8x128xf32>
    %c0_9 = arith.constant 0 : index
    %c0_10 = arith.constant 0 : index
    %23 = vector.load %arg4[%c0_9, %c0_10] : memref<1x128xf32, #tpu.memory_space<vmem>>, vector<1x128xf32>
    %24 = vector.broadcast %23 : vector<1x128xf32> to vector<8x128xf32>
    %25 = arith.addf %22, %24 : vector<8x128xf32>
    %c0_11 = arith.constant 0 : index
    %c0_12 = arith.constant 0 : index
    %26 = vector.load %arg5[%c0_11, %c0_12] : memref<8x128xf32, #tpu.memory_space<vmem>>, vector<8x128xf32>
    tpu.vector_store %arg5[%c0_11, %c0_12], %25 {strides = array<i32>} : memref<8x128xf32, #tpu.memory_space<vmem>>, vector<8x128xf32>,
    return
  }
  func.func @transform_0(%arg0: i32) -> (i32, i32) {
    %c0_i32 = arith.constant 0 : i32
    %c0_i32_0 = arith.constant 0 : i32
    return %arg0, %c0_i32 : i32, i32
  }
  func.func @transform_1(%arg0: i32) -> (i32, i32) {
    %c0_i32 = arith.constant 0 : i32
    %c0_i32_0 = arith.constant 0 : i32
    %c0_i32_1 = arith.constant 0 : i32
    return %c0_i32, %c0_i32_0 : i32, i32
  }
  func.func @transform_2(%arg0: i32) -> (i32, i32) {
    %c0_i32 = arith.constant 0 : i32
    %c0_i32_0 = arith.constant 0 : i32
    %c0_i32_1 = arith.constant 0 : i32
    return %c0_i32, %c0_i32_0 : i32, i32
  }
  func.func @transform_3(%arg0: i32) -> (i32, i32) {
    %c0_i32 = arith.constant 0 : i32
    %c0_i32_0 = arith.constant 0 : i32
    %c0_i32_1 = arith.constant 0 : i32
    return %c0_i32, %c0_i32_0 : i32, i32
  }
  func.func @transform_4(%arg0: i32) -> (i32, i32) {
    %c0_i32 = arith.constant 0 : i32
    %c0_i32_0 = arith.constant 0 : i32
    return %arg0, %c0_i32 : i32, i32
  }
}

</mosaic_0001>

<bundles_post_ra>
// kernel: tpu_custom_call.1
= control target key start
LH: loop header
LB: loop body
LE: loop exit
PB: predicated region body
PF: predicated region fallthrough
CT: control target
= control target key end

     0   :  { %9 = vsyncpa [#allocation3], 0  ;;  %s2725_s0 = inlined_call_operand.hbm [shape: f32[8,32], index: 0, kind: input, shape index: {}]   ;;  %s2726_s1 = inlined_call_operand.hbm [shape: f32[32,4224], index: 1, kind: input, shape index: {}]   ;;  %s2727_s2 = inlined_call_operand.hbm [shape: f32[128,128], index: 2, kind: input, shape index: {}]   ;;  %s2728_s3 = inlined_call_operand.vmem [shape: f32[1,128], index: 3, kind: input, shape index: {}]   ;;  %s2729_s4 = inlined_call_operand.hbm [shape: f32[8,128], index: 4, kind: output, shape index: {}]  }
   0x1   :  { %10 = vsyncpa [#allocation6], 0  ;;  %s27_s17 = sshll.u32 %s2726_s1, 4  ;;  %s28_s17 = int_to_ptr.hbm [resolvable:$true] %s27_s17 }
   0x2   :  { %11 = vsyncpa [#allocation4], 0  ;;  %s1977_s18 = smov [#allocation5]   ;;  %s17_s22 = sshll.u32 %s2725_s0, 4  ;;  %s18_s22 = int_to_ptr.hbm [resolvable:$true] %s17_s22 }
   0x3   :  { %s29_s19 = sshll.u32 %s1977_s18, 4  ;;  %s1978_s23 = smov 4224   ;;  %s30_s19 = int_to_ptr.vmem [resolvable:$true] %s29_s19 }
   0x4   :  { %s1979_s24 = smov 264   ;;  %s1980_s25 = smov [#allocation2]  }
   0x5   :  { %35 = dma.hbm_to_vmem [thread:$0]  %s28_s17, 16896, %s30_s19, [#allocation6], %s1978_s23, %s1978_s23, %s1979_s24  }
   0x6   :  { %s19_s26 = sshll.u32 %s1980_s25, 4  ;;  %s40_s29 = sshll.u32 %s2727_s2, 4  ;;  %s20_s26 = int_to_ptr.vmem [resolvable:$true] %s19_s26  ;;  %s41_s29 = int_to_ptr.hbm [resolvable:$true] %s40_s29 }
   0x7   :  { %22 = dma.hbm_to_vmem [thread:$0]  %s18_s22, 128, %s20_s26, [#allocation3]  }
   0x8   :  { %s1981_s1 = smov [#allocation7]   ;;  %s1982_s5 = smov 128  }
   0x9   :  { %s42_s30 = sshll.u32 %s1981_s1, 4  ;;  %s1983_s6 = smov 8   ;;  %s43_s30 = int_to_ptr.vmem [resolvable:$true] %s42_s30 }
   0xa   :  { %48 = dma.hbm_to_vmem [thread:$0]  %s41_s29, 2048, %s43_s30, [#allocation6], %s1982_s5, %s1982_s5, %s1983_s6  }
   0xb   :  { %1971 = dma.done.wait [#allocation3], 128  }
   0xc   :  { %1972 = vsyncadd [#allocation3], 4294967168 }
   0xd   :  { %1973 = dma.done.wait [#allocation6], 18944  }
   0xe   :  { %1974 = vsyncadd [#allocation6], 4294948352  ;;  %v164_v0 = vld [vmem:[#allocation5 + $0x320] sm:$0xff]  ;;  %v166_v1 = vld [vmem:[#allocation5 + $0x330] sm:$0xff]  ;;  %vm196_vm0 = vcmask 261120   ;;  %vm861_vm1 = vcmask 1047556  }
   0xf   :  { %v131_v2 = vld [vmem:[#allocation5 + $0x218] sm:$0xff]  ;;  %232 = vmatpush.msra.mxu2 %v164_v0  ;;  %272 = vmatpush.msra.mxu3 %v166_v1  ;;  %v133_v3 = vld [vmem:[#allocation5 + $0x228] sm:$0xff]  ;;  %v98_v5 = vld [vmem:[#allocation5 + $0x110] sm:$0xff]  ;;  %s1986_s7 = smov [#allocation8]   ;;  %s1772_s11 = sshll.u32 %s2729_s4, 4  ;;  %s1773_s11 = int_to_ptr.hbm [resolvable:$true] %s1772_s11 }
  0x10   :  { %v163_v4 = vld [vmem:[#allocation5 + $0x318] sm:$0xff]  ;;  %v100_v6 = vld [vmem:[#allocation5 + $0x120] sm:$0xff]  ;;  %v130_v7 = vld [vmem:[#allocation5 + $0x210] sm:$0xff]  ;;  %s1770_s8 = sshll.u32 %s1986_s7, 4  ;;  %s1771_s8 = int_to_ptr.vmem [resolvable:$true] %s1770_s8 }
  0x11   :  { %212 = vmatpush.msra.mxu0 %v163_v4  ;;  %233 = vmatpush.msra.mxu2 %v131_v2  ;;  %v65_v8 = vld [vmem:[#allocation5 + $0x8] sm:$0xff]  ;;  %v67_v9 = vld [vmem:[#allocation5 + $0x18] sm:$0xff]  ;;  %v168_v12 = vld [vmem:[#allocation5 + $0x340] sm:$0xff] }
  0x12   :  { %273 = vmatpush.msra.mxu3 %v133_v3  ;;  %v97_v10 = vld [vmem:[#allocation5 + $0x108] sm:$0xff]  ;;  %v2021_v11 = vld [vmem:[#allocation2] sm:$0xff]  ;;  %v64_v14 = vld [vmem:[#allocation5] sm:$0xff] }
  0x13   :  { %213 = vmatpush.msra.mxu0 %v130_v7  ;;  %234 = vmatpush.msra.mxu2 %v98_v5  ;;  %v165_v13 = vld [vmem:[#allocation5 + $0x328] sm:$0xff]  ;;  %v135_v15 = vld [vmem:[#allocation5 + $0x238] sm:$0xff]  ;;  %v132_v16 = vld [vmem:[#allocation5 + $0x220] sm:$0xff] }
  0x14   :  { %274 = vmatpush.msra.mxu3 %v100_v6  ;;  %v102_v17 = vld [vmem:[#allocation5 + $0x130] sm:$0xff]  ;;  %v99_v18 = vld [vmem:[#allocation5 + $0x118] sm:$0xff]  ;;  %v69_v20 = vld [vmem:[#allocation5 + $0x28] sm:$0xff] }
  0x15   :  { %214 = vmatpush.msra.mxu0 %v97_v10  ;;  %235 = vmatpush.msra.mxu2 %v65_v8  ;;  %v167_v19 = vld [vmem:[#allocation5 + $0x338] sm:$0xff]  ;;  %v66_v21 = vld [vmem:[#allocation5 + $0x10] sm:$0xff]  ;;  %v169_v23 = vld [vmem:[#allocation5 + $0x348] sm:$0xff] }
  0x16   :  { %275 = vmatpush.msra.mxu3 %v67_v9  ;;  %1784 = vmatmul.msk.f32.vlgmr.msra.gmra.mxu2 %vm196_vm0, %v2021_v11  ;;  %v134_v22 = vld [vmem:[#allocation5 + $0x230] sm:$0xff]  ;;  %v101_v25 = vld [vmem:[#allocation5 + $0x128] sm:$0xff]  ;;  %v136_v26 = vld [vmem:[#allocation5 + $0x240] sm:$0xff] }
  0x17   :  { %1786 = vmatmul.msk.f32.vlgmr.msra.gmra.mxu3 %vm196_vm0, %v2021_v11  ;;  %252 = vmatpush.msrb.mxu2 %v165_v13  ;;  %v170_v24 = vld [vmem:[#allocation5 + $0x350] sm:$0xff]  ;;  %v172_v27 = vld [vmem:[#allocation5 + $0x360] sm:$0xff]  ;;  %v137_v28 = vld [vmem:[#allocation5 + $0x248] sm:$0xff] }
  0x18   :  { %312 = vmatpush.msrb.mxu3 %v168_v12  ;;  %215 = vmatpush.msra.mxu0 %v64_v14  ;;  %v68_v29 = vld [vmem:[#allocation5 + $0x20] sm:$0xff]  ;;  %v103_v30 = vld [vmem:[#allocation5 + $0x138] sm:$0xff]  ;;  %v70_v33 = vld [vmem:[#allocation5 + $0x30] sm:$0xff] }
  0x19   :  { %253 = vmatpush.msrb.mxu2 %v132_v16  ;;  %1783 = vmatmul.msk.f32.vlgmr.msra.gmra.mxu0 %vm196_vm0, %v2021_v11  ;;  %v104_v31 = vld [vmem:[#allocation5 + $0x140] sm:$0xff]  ;;  %v171_v32 = vld [vmem:[#allocation5 + $0x358] sm:$0xff]  ;;  %v138_v36 = vld [vmem:[#allocation5 + $0x250] sm:$0xff] }
  0x1a   :  { %313 = vmatpush.msrb.mxu3 %v135_v15  ;;  %292 = vmatpush.msrb.mxu0 %v167_v19  ;;  %v139_v34 = vld [vmem:[#allocation5 + $0x258] sm:$0xff]  ;;  %v174_v37 = vld [vmem:[#allocation5 + $0x370] sm:$0xff]  ;;  %v105_v38 = vld [vmem:[#allocation5 + $0x148] sm:$0xff] }
  0x1b   :  { %254 = vmatpush.msrb.mxu2 %v99_v18  ;;  %392 = vmatpush.msra.mxu1 %v172_v27  ;;  %v71_v35 = vld [vmem:[#allocation5 + $0x38] sm:$0xff]  ;;  %v173_v39 = vld [vmem:[#allocation5 + $0x368] sm:$0xff]  ;;  %v106_v40 = vld [vmem:[#allocation5 + $0x150] sm:$0xff] }
  0x1c   :  { %314 = vmatpush.msrb.mxu3 %v102_v17  ;;  %293 = vmatpush.msrb.mxu0 %v134_v22  ;;  %v141_v41 = vld [vmem:[#allocation5 + $0x268] sm:$0xff]  ;;  %v72_v42 = vld [vmem:[#allocation5 + $0x40] sm:$0xff]  ;;  %v175_v45 = vld [vmem:[#allocation5 + $0x378] sm:$0xff] }
  0x1d   :  { %255 = vmatpush.msrb.mxu2 %v66_v21  ;;  %393 = vmatpush.msra.mxu1 %v139_v34  ;;  %v140_v43 = vld [vmem:[#allocation5 + $0x260] sm:$0xff]  ;;  %v107_v46 = vld [vmem:[#allocation5 + $0x158] sm:$0xff]  ;;  %v73_v47 = vld [vmem:[#allocation5 + $0x48] sm:$0xff] }
  0x1e   :  { %315 = vmatpush.msrb.mxu3 %v69_v20  ;;  %1785 = vmatmul.msk.f32.vlgmr.msrb.gmra.mxu2 %vm196_vm0, %v2021_v11  ;;  %v108_v44 = vld [vmem:[#allocation5 + $0x160] sm:$0xff]  ;;  %v75_v48 = vld [vmem:[#allocation5 + $0x58] sm:$0xff]  ;;  %v142_v49 = vld [vmem:[#allocation5 + $0x270] sm:$0xff] }
  0x1f   :  { %1788 = vmatmul.msk.f32.vlgmr.msrb.gmra.mxu3 %vm196_vm0, %v2021_v11  ;;  %332 = vmatpush.msra.mxu2 %v169_v23  ;;  %v74_v50 = vld [vmem:[#allocation5 + $0x50] sm:$0xff]  ;;  %v109_v52 = vld [vmem:[#allocation5 + $0x168] sm:$0xff]  ;;  %v76_v55 = vld [vmem:[#allocation5 + $0x60] sm:$0xff] }
  0x20   :  { %352 = vmatpush.msra.mxu3 %v170_v24  ;;  %294 = vmatpush.msrb.mxu0 %v101_v25  ;;  %v178_v51 = vld [vmem:[#allocation5 + $0x390] sm:$0xff]  ;;  %v177_v53 = vld [vmem:[#allocation5 + $0x388] sm:$0xff]  ;;  %v144_v56 = vld [vmem:[#allocation5 + $0x280] sm:$0xff] }
  0x21   :  { %333 = vmatpush.msra.mxu2 %v136_v26  ;;  %394 = vmatpush.msra.mxu1 %v106_v40  ;;  %v145_v54 = vld [vmem:[#allocation5 + $0x288] sm:$0xff]  ;;  %v112_v57 = vld [vmem:[#allocation5 + $0x180] sm:$0xff]  ;;  %v111_v59 = vld [vmem:[#allocation5 + $0x178] sm:$0xff] }
  0x22   :  { %353 = vmatpush.msra.mxu3 %v137_v28  ;;  %295 = vmatpush.msrb.mxu0 %v68_v29  ;;  %v176_v58 = vld [vmem:[#allocation5 + $0x380] sm:$0xff]  ;;  %v179_v60 = vld [vmem:[#allocation5 + $0x398] sm:$0xff]  ;;  %v78_v63 = vld [vmem:[#allocation5 + $0x70] sm:$0xff] }
  0x23   :  { %1787 = vmatmul.msk.f32.vlgmr.msrb.gmra.mxu0 %vm196_vm0, %v2021_v11  ;;  %334 = vmatpush.msra.mxu2 %v103_v30  ;;  %v79_v61 = vld [vmem:[#allocation5 + $0x78] sm:$0xff]  ;;  %v146_v0 = vld [vmem:[#allocation5 + $0x290] sm:$0xff]  ;;  %v113_v2 = vld [vmem:[#allocation5 + $0x188] sm:$0xff] }
  0x24   :  { %354 = vmatpush.msra.mxu3 %v104_v31  ;;  %372 = vmatpush.msra.mxu0 %v171_v32  ;;  %v143_v62 = vld [vmem:[#allocation5 + $0x278] sm:$0xff]  ;;  %v110_v1 = vld [vmem:[#allocation5 + $0x170] sm:$0xff]  ;;  %v181_v3 = vld [vmem:[#allocation5 + $0x3a8] sm:$0xff] }
  0x25   :  { %335 = vmatpush.msra.mxu2 %v70_v33  ;;  %395 = vmatpush.msra.mxu1 %v73_v47  ;;  %v182_v4 = vld [vmem:[#allocation5 + $0x3b0] sm:$0xff]  ;;  %v77_v5 = vld [vmem:[#allocation5 + $0x68] sm:$0xff]  ;;  %v80_v6 = vld [vmem:[#allocation5 + $0x80] sm:$0xff] }
  0x26   :  { %355 = vmatpush.msra.mxu3 %v71_v35  ;;  %373 = vmatpush.msra.mxu0 %v138_v36  ;;  %v148_v7 = vld [vmem:[#allocation5 + $0x2a0] sm:$0xff]  ;;  %v149_v8 = vld [vmem:[#allocation5 + $0x2a8] sm:$0xff]  ;;  %v115_v10 = vld [vmem:[#allocation5 + $0x198] sm:$0xff] }
  0x27   :  { %1789 = vmatmul.msk.f32.vlgmr.msra.gmra.mxu2 %vm196_vm0, %v2021_v11  ;;  %1790 = vmatmul.msk.f32.vlgmr.msra.gmra.mxu3 %vm196_vm0, %v2021_v11  ;;  %v180_v9 = vld [vmem:[#allocation5 + $0x3a0] sm:$0xff]  ;;  %v183_v13 = vld [vmem:[#allocation5 + $0x3b8] sm:$0xff]  ;;  %v82_v15 = vld [vmem:[#allocation5 + $0x90] sm:$0xff] }
  0x28   :  { %432 = vmatpush.msrb.mxu3 %v174_v37  ;;  %374 = vmatpush.msra.mxu0 %v105_v38  ;;  %v116_v12 = vld [vmem:[#allocation5 + $0x1a0] sm:$0xff]  ;;  %v147_v14 = vld [vmem:[#allocation5 + $0x298] sm:$0xff]  ;;  %v150_v17 = vld [vmem:[#allocation5 + $0x2b0] sm:$0xff] }
  0x29   :  { %412 = vmatpush.msrb.mxu2 %v173_v39  ;;  %1792 = vmatmul.msk.f32.vlgmr.msra.gmra.mxu1 %vm196_vm0, %v2021_v11  ;;  %v83_v16 = vld [vmem:[#allocation5 + $0x98] sm:$0xff]  ;;  %v114_v18 = vld [vmem:[#allocation5 + $0x190] sm:$0xff]  ;;  %v117_v19 = vld [vmem:[#allocation5 + $0x1a8] sm:$0xff] }
  0x2a   :  { %433 = vmatpush.msrb.mxu3 %v141_v41  ;;  %375 = vmatpush.msra.mxu0 %v72_v42  ;;  %v185_v20 = vld [vmem:[#allocation5 + $0x3c8] sm:$0xff]  ;;  %v186_v21 = vld [vmem:[#allocation5 + $0x3d0] sm:$0xff]  ;;  %v84_v23 = vld [vmem:[#allocation5 + $0xa0] sm:$0xff] }
  0x2b   :  { %413 = vmatpush.msrb.mxu2 %v140_v43  ;;  %1791 = vmatmul.msk.f32.vlgmr.msra.gmra.mxu0 %vm196_vm0, %v2021_v11  ;;  %v81_v22 = vld [vmem:[#allocation5 + $0x88] sm:$0xff]  ;;  %v152_v24 = vld [vmem:[#allocation5 + $0x2c0] sm:$0xff]  ;;  %v119_v27 = vld [vmem:[#allocation5 + $0x1b8] sm:$0xff] }
  0x2c   :  { %434 = vmatpush.msrb.mxu3 %v108_v44  ;;  %452 = vmatpush.msrb.mxu0 %v175_v45  ;;  %v153_v25 = vld [vmem:[#allocation5 + $0x2c8] sm:$0xff]  ;;  %v184_v26 = vld [vmem:[#allocation5 + $0x3c0] sm:$0xff]  ;;  %v187_v29 = vld [vmem:[#allocation5 + $0x3d8] sm:$0xff] }
  0x2d   :  { %414 = vmatpush.msrb.mxu2 %v107_v46  ;;  %472 = vmatpush.msrb.mxu1 %v176_v58  ;;  %v120_v28 = vld [vmem:[#allocation5 + $0x1c0] sm:$0xff]  ;;  %v151_v30 = vld [vmem:[#allocation5 + $0x2b8] sm:$0xff]  ;;  %v86_v31 = vld [vmem:[#allocation5 + $0xb0] sm:$0xff] }
  0x2e   :  { %435 = vmatpush.msrb.mxu3 %v75_v48  ;;  %453 = vmatpush.msrb.mxu0 %v142_v49  ;;  %v87_v32 = vld [vmem:[#allocation5 + $0xb8] sm:$0xff]  ;;  %v154_v33 = vld [vmem:[#allocation5 + $0x2d0] sm:$0xff]  ;;  %v121_v35 = vld [vmem:[#allocation5 + $0x1c8] sm:$0xff] }
  0x2f   :  { %415 = vmatpush.msrb.mxu2 %v74_v50  ;;  %1794 = vmatmul.msk.f32.vlgmr.msrb.gmra.mxu3 %vm196_vm0, %v2021_v11  ;;  %v118_v34 = vld [vmem:[#allocation5 + $0x1b0] sm:$0xff]  ;;  %v189_v36 = vld [vmem:[#allocation5 + $0x3e8] sm:$0xff]  ;;  %v88_v39 = vld [vmem:[#allocation5 + $0xc0] sm:$0xff] }
  0x30   :  { %1793 = vmatmul.msk.f32.vlgmr.msrb.gmra.mxu2 %vm196_vm0, %v2021_v11  ;;  %512 = vmatpush.msra.mxu3 %v178_v51  ;;  %v190_v37 = vld [vmem:[#allocation5 + $0x3f0] sm:$0xff]  ;;  %v85_v38 = vld [vmem:[#allocation5 + $0xa8] sm:$0xff]  ;;  %v156_v40 = vld [vmem:[#allocation5 + $0x2e0] sm:$0xff] }
  0x31   :  { %454 = vmatpush.msrb.mxu0 %v109_v52  ;;  %492 = vmatpush.msra.mxu2 %v177_v53  ;;  %v157_v41 = vld [vmem:[#allocation5 + $0x2e8] sm:$0xff]  ;;  %v188_v42 = vld [vmem:[#allocation5 + $0x3e0] sm:$0xff]  ;;  %v123_v43 = vld [vmem:[#allocation5 + $0x1d8] sm:$0xff] }
  0x32   :  { %513 = vmatpush.msra.mxu3 %v145_v54  ;;  %473 = vmatpush.msrb.mxu1 %v143_v62  ;;  %v124_v44 = vld [vmem:[#allocation5 + $0x1e0] sm:$0xff]  ;;  %v191_v45 = vld [vmem:[#allocation5 + $0x3f8] sm:$0xff]  ;;  %v90_v47 = vld [vmem:[#allocation5 + $0xd0] sm:$0xff] }
  0x33   :  { %455 = vmatpush.msrb.mxu0 %v76_v55  ;;  %493 = vmatpush.msra.mxu2 %v144_v56  ;;  %v155_v46 = vld [vmem:[#allocation5 + $0x2d8] sm:$0xff]  ;;  %v158_v49 = vld [vmem:[#allocation5 + $0x2f0] sm:$0xff]  ;;  %v125_v51 = vld [vmem:[#allocation5 + $0x1e8] sm:$0xff] }
  0x34   :  { %1795 = vmatmul.msk.f32.vlgmr.msrb.gmra.mxu0 %vm196_vm0, %v2021_v11  ;;  %514 = vmatpush.msra.mxu3 %v112_v57  ;;  %v91_v48 = vld [vmem:[#allocation5 + $0xd8] sm:$0xff]  ;;  %v122_v50 = vld [vmem:[#allocation5 + $0x1d0] sm:$0xff]  ;;  %v193_v52 = vld [vmem:[#allocation5 + $0x408] sm:$0xff] }
  0x35   :  { %494 = vmatpush.msra.mxu2 %v111_v59  ;;  %532 = vmatpush.msra.mxu0 %v179_v60  ;;  %v194_v53 = vld [vmem:[#allocation5 + $0x410] sm:$0xff]  ;;  %v89_v54 = vld [vmem:[#allocation5 + $0xc8] sm:$0xff]  ;;  %v92_v55 = vld [vmem:[#allocation5 + $0xe0] sm:$0xff] }
  0x36   :  { %515 = vmatpush.msra.mxu3 %v79_v61  ;;  %474 = vmatpush.msrb.mxu1 %v110_v1  ;;  %v160_v56 = vld [vmem:[#allocation5 + $0x300] sm:$0xff]  ;;  %v161_v57 = vld [vmem:[#allocation5 + $0x308] sm:$0xff]  ;;  %v127_v59 = vld [vmem:[#allocation5 + $0x1f8] sm:$0xff] }
  0x37   :  { %495 = vmatpush.msra.mxu2 %v78_v63  ;;  %533 = vmatpush.msra.mxu0 %v146_v0  ;;  %v192_v58 = vld [vmem:[#allocation5 + $0x400] sm:$0xff]  ;;  %v195_v61 = vld [vmem:[#allocation5 + $0x418] sm:$0xff]  ;;  %v94_v63 = vld [vmem:[#allocation5 + $0xf0] sm:$0xff] }
  0x38   :  { %1797 = vmatmul.msk.f32.vlgmr.msra.gmra.mxu2 %vm196_vm0, %v2021_v11  ;;  %1798 = vmatmul.msk.f32.vlgmr.msra.gmra.mxu3 %vm196_vm0, %v2021_v11  ;;  %v128_v60 = vld [vmem:[#allocation5 + $0x200] sm:$0xff]  ;;  %v159_v62 = vld [vmem:[#allocation5 + $0x2f8] sm:$0xff]  ;;  %v162_v1 = vld [vmem:[#allocation5 + $0x310] sm:$0xff] }
  0x39   :  { %534 = vmatpush.msra.mxu0 %v113_v2  ;;  %572 = vmatpush.msrb.mxu2 %v181_v3  ;;  %v95_v0 = vld [vmem:[#allocation5 + $0xf8] sm:$0xff]  ;;  %v126_v2 = vld [vmem:[#allocation5 + $0x1f0] sm:$0xff]  ;;  %v129_v3 = vld [vmem:[#allocation5 + $0x208] sm:$0xff] }
  0x3a   :  { %592 = vmatpush.msrb.mxu3 %v182_v4  ;;  %475 = vmatpush.msrb.mxu1 %v77_v5  ;;  %v93_v4 = vld [vmem:[#allocation5 + $0xe8] sm:$0xff]  ;;  %v96_v5 = vld [vmem:[#allocation5 + $0x100] sm:$0xff] }
  0x3b   :  { %535 = vmatpush.msra.mxu0 %v80_v6  ;;  %573 = vmatpush.msrb.mxu2 %v148_v7 }
  0x3c   :  { %593 = vmatpush.msrb.mxu3 %v149_v8  ;;  %1796 = vmatmul.msk.f32.vlgmr.msrb.gmra.mxu1 %vm196_vm0, %v2021_v11 }
  0x3d   :  { %1799 = vmatmul.msk.f32.vlgmr.msra.gmra.mxu0 %vm196_vm0, %v2021_v11  ;;  %552 = vmatpush.msra.mxu1 %v180_v9  ;;  %v1984_v9 = vmov 1983009808  }
  0x3e   :  { %574 = vmatpush.msrb.mxu2 %v115_v10  ;;  %594 = vmatpush.msrb.mxu3 %v116_v12  ;;  %v866_v10 = vunpack.c.l.s4 %v1984_v9 }
  0x3f   :  { %612 = vmatpush.msrb.mxu0 %v183_v13  ;;  %553 = vmatpush.msra.mxu1 %v147_v14 }
  0x40   :  { %575 = vmatpush.msrb.mxu2 %v82_v15  ;;  %595 = vmatpush.msrb.mxu3 %v83_v16 }
  0x41   :  { %613 = vmatpush.msrb.mxu0 %v150_v17  ;;  %1801 = vmatmul.msk.f32.vlgmr.msrb.gmra.mxu2 %vm196_vm0, %v2021_v11  ;;  %v2091_v17 = vunpack.c.0.s8 %v866_v10 }
  0x42   :  { %1802 = vmatmul.msk.f32.vlgmr.msrb.gmra.mxu3 %vm196_vm0, %v2021_v11  ;;  %554 = vmatpush.msra.mxu1 %v114_v18 }
  0x43   :  { %614 = vmatpush.msrb.mxu0 %v117_v19  ;;  %652 = vmatpush.msra.mxu2 %v185_v20 }
  0x44   :  { %672 = vmatpush.msra.mxu3 %v186_v21  ;;  %555 = vmatpush.msra.mxu1 %v81_v22  ;;  %v1985_v21 = vmov 1934713408  }
  0x45   :  { %615 = vmatpush.msrb.mxu0 %v84_v23  ;;  %653 = vmatpush.msra.mxu2 %v152_v24  ;;  %v914_v22 = vunpack.c.l.s4 %v1985_v21 }
  0x46   :  { %673 = vmatpush.msra.mxu3 %v153_v25  ;;  %1800 = vmatmul.msk.f32.vlgmr.msra.gmra.mxu1 %vm196_vm0, %v2021_v11 }
  0x47   :  { %1803 = vmatmul.msk.f32.vlgmr.msrb.gmra.mxu0 %vm196_vm0, %v2021_v11  ;;  %632 = vmatpush.msrb.mxu1 %v184_v26 }
  0x48   :  { %654 = vmatpush.msra.mxu2 %v119_v27  ;;  %674 = vmatpush.msra.mxu3 %v120_v28 }
  0x49   :  { %692 = vmatpush.msra.mxu0 %v187_v29  ;;  %633 = vmatpush.msrb.mxu1 %v151_v30  ;;  %v2100_v29 = vunpack.c.0.s8 %v914_v22 }
  0x4a   :  { %655 = vmatpush.msra.mxu2 %v86_v31  ;;  %675 = vmatpush.msra.mxu3 %v87_v32 }
  0x4b   :  { %693 = vmatpush.msra.mxu0 %v154_v33  ;;  %1805 = vmatmul.msk.f32.vlgmr.msra.gmra.mxu2 %vm196_vm0, %v2021_v11 }
  0x4c   :  { %1806 = vmatmul.msk.f32.vlgmr.msra.gmra.mxu3 %vm196_vm0, %v2021_v11  ;;  %634 = vmatpush.msrb.mxu1 %v118_v34 }
  0x4d   :  { %694 = vmatpush.msra.mxu0 %v121_v35  ;;  %732 = vmatpush.msrb.mxu2 %v189_v36 }
  0x4e   :  { %752 = vmatpush.msrb.mxu3 %v190_v37  ;;  %635 = vmatpush.msrb.mxu1 %v85_v38 }
  0x4f   :  { %695 = vmatpush.msra.mxu0 %v88_v39  ;;  %733 = vmatpush.msrb.mxu2 %v156_v40 }
  0x50   :  { %753 = vmatpush.msrb.mxu3 %v157_v41  ;;  %1804 = vmatmul.msk.f32.vlgmr.msrb.gmra.mxu1 %vm196_vm0, %v2021_v11 }
  0x51   :  { %1807 = vmatmul.msk.f32.vlgmr.msra.gmra.mxu0 %vm196_vm0, %v2021_v11  ;;  %712 = vmatpush.msra.mxu1 %v188_v42 }
  0x52   :  { %734 = vmatpush.msrb.mxu2 %v123_v43  ;;  %754 = vmatpush.msrb.mxu3 %v124_v44 }
  0x53   :  { %772 = vmatpush.msrb.mxu0 %v191_v45  ;;  %713 = vmatpush.msra.mxu1 %v155_v46 }
  0x54   :  { %735 = vmatpush.msrb.mxu2 %v90_v47  ;;  %755 = vmatpush.msrb.mxu3 %v91_v48 }
  0x55   :  { %773 = vmatpush.msrb.mxu0 %v158_v49  ;;  %1809 = vmatmul.msk.f32.vlgmr.msrb.gmra.mxu2 %vm196_vm0, %v2021_v11 }
  0x56   :  { %1810 = vmatmul.msk.f32.vlgmr.msrb.gmra.mxu3 %vm196_vm0, %v2021_v11  ;;  %714 = vmatpush.msra.mxu1 %v122_v50 }
  0x57   :  { %774 = vmatpush.msrb.mxu0 %v125_v51  ;;  %812 = vmatpush.msra.mxu2 %v193_v52 }
  0x58   :  { %832 = vmatpush.msra.mxu3 %v194_v53  ;;  %715 = vmatpush.msra.mxu1 %v89_v54 }
  0x59   :  { %775 = vmatpush.msrb.mxu0 %v92_v55  ;;  %813 = vmatpush.msra.mxu2 %v160_v56 }
  0x5a   :  { %833 = vmatpush.msra.mxu3 %v161_v57  ;;  %1808 = vmatmul.msk.f32.vlgmr.msra.gmra.mxu1 %vm196_vm0, %v2021_v11 }
  0x5b   :  { %1811 = vmatmul.msk.f32.vlgmr.msrb.gmra.mxu0 %vm196_vm0, %v2021_v11  ;;  %792 = vmatpush.msrb.mxu1 %v192_v58 }
  0x5c   :  { %814 = vmatpush.msra.mxu2 %v127_v59  ;;  %834 = vmatpush.msra.mxu3 %v128_v60 }
  0x5d   :  { %852 = vmatpush.msra.mxu0 %v195_v61  ;;  %793 = vmatpush.msrb.mxu1 %v159_v62 }
  0x5e   :  { %815 = vmatpush.msra.mxu2 %v94_v63  ;;  %835 = vmatpush.msra.mxu3 %v95_v0 }
  0x5f   :  { %853 = vmatpush.msra.mxu0 %v162_v1  ;;  %1813 = vmatmul.msk.f32.vlgmr.msra.gmra.mxu2 %vm196_vm0, %v2021_v11 }
  0x60   :  { %1814 = vmatmul.msk.f32.vlgmr.msra.gmra.mxu3 %vm196_vm0, %v2021_v11  ;;  %794 = vmatpush.msrb.mxu1 %v126_v2 }
  0x61   :  { %854 = vmatpush.msra.mxu0 %v129_v3 }
  0x62   :  { %795 = vmatpush.msrb.mxu1 %v93_v4 }
  0x63   :  { %855 = vmatpush.msra.mxu0 %v96_v5  ;;  %1812 = vmatmul.msk.f32.vlgmr.msrb.gmra.mxu1 %vm196_vm0, %v2021_v11 }
  0x64   :  { %1815 = vmatmul.msk.f32.vlgmr.msra.gmra.mxu0 %vm196_vm0, %v2021_v11 }
  0x96   :  { %v2089_v6 = vpop.f32.mrf.mxu0 }
  0x97   :  { %v1310_v30 = vrot.slane %v2089_v6, 1  ;;  %v1311_v31 = vrot.slane %v2089_v6, 2  ;;  %v1312_v32 = vrot.slane %v2089_v6, 3  ;;  %v1315_v35 = vrot.slane %v2089_v6, 6 }
  0x98   :  { %v1317_v36 = vperm.slane %v2089_v6, 0  ;;  %v1313_v38 = vrot.slane %v2089_v6, 4  ;;  %v1314_v44 = vrot.slane %v2089_v6, 5  ;;  %v1316_v0 = vrot.slane %v2089_v6, 7 }
  0x99   :  { %v237_v7 = vpop.f32.mrf.mxu2  ;;  %v2122_v61 = vperm.slane %v1311_v31, 0  ;;  %v2139_v21 = vperm.slane %v1310_v30, 0  ;;  %v2148_v31 = vperm.slane %v1315_v35, 0 }
  0x9a   :  { %v277_v8 = vpop.f32.mrf.mxu3  ;;  %v863_v13 = vrot.slane %v237_v7, 4  ;;  %v2151_v30 = vperm.slane %v1316_v0, 0 }
  0x9b   :  { %v860_v12 = vrot.slane %v277_v8, 4 }
  0x9c   :  { %v864_v23 = vsel %vm861_vm1, %v277_v8, %v863_v13 }
  0x9d   :  { %v862_v20 = vsel %vm861_vm1, %v860_v12, %v237_v7  ;;  %v872_v28 = vperm.slane %v864_v23, %v2091_v17 }
  0x9e   :  { %v868_v26 = vperm.slane %v862_v20, %v2091_v17 }
  0x9f   :  { %v923_v45 = vrot.slane %v872_v28, 4 }
  0xa0   :  { %v297_v14 = vpop.f32.mrf.mxu0  ;;  %v911_v39 = vrot.slane %v868_v26, 4 }
  0xa1   :  { %v873_v15 = vrot.slane %v297_v14, 4  ;;  %v257_v16 = vpop.f32.mrf.mxu2 }
  0xa2   :  { %v875_v18 = vrot.slane %v257_v16, 4  ;;  %v317_v19 = vpop.f32.mrf.mxu3 }
  0xa3   :  { %v874_v11 = vsel %vm861_vm1, %v873_v15, %v257_v16  ;;  %v887_v41 = vrot.slane %v317_v19, 4 }
  0xa4   :  { %v880_v24 = vperm.slane %v874_v11, %v2091_v17  ;;  %v876_v25 = vsel %vm861_vm1, %v297_v14, %v875_v18 }
  0xa5   :  { %v884_v33 = vperm.slane %v876_v25, %v2091_v17 }
  0xa6   :  { %v909_v27 = vrot.slane %v880_v24, 4  ;;  %v912_v49 = vsel %vm861_vm1, %v880_v24, %v911_v39  ;;  %v397_v5 = vpop.f32.mrf.mxu1 }
  0xa7   :  { %v921_v50 = vrot.slane %v884_v33, 4  ;;  %v924_v57 = vsel %vm861_vm1, %v884_v33, %v923_v45  ;;  %v2125_v62 = vperm.slane %v912_v49, %v2100_v29 }
  0xa8   :  { %v377_v34 = vpop.f32.mrf.mxu0  ;;  %v910_v40 = vsel %vm861_vm1, %v909_v27, %v868_v26  ;;  %v932_v7 = vperm.slane %v924_v57, %v2100_v29  ;;  %v2144_v26 = vperm.slane %v1313_v38, 0 }
  0xa9   :  { %v897_v37 = vrot.slane %v377_v34, 4  ;;  %v916_v53 = vperm.slane %v910_v40, %v2100_v29  ;;  %v922_v1 = vsel %vm861_vm1, %v921_v50, %v872_v28  ;;  %v2146_v28 = vperm.slane %v1314_v44, 0 }
  0xaa   :  { %v337_v42 = vpop.f32.mrf.mxu2  ;;  %v357_v43 = vpop.f32.mrf.mxu3  ;;  %v928_v20 = vperm.slane %v922_v1, %v2100_v29  ;;  %v971_v27 = vrot.slane %v932_v7, 4  ;;  %v963_v33 = vrot.slane %v2125_v62, 4 }
  0xab   :  { %v898_v46 = vsel %vm861_vm1, %v897_v37, %v337_v42  ;;  %v899_v47 = vrot.slane %v337_v42, 4  ;;  %v885_v48 = vrot.slane %v357_v43, 4  ;;  %v888_v52 = vsel %vm861_vm1, %v357_v43, %v887_v41 }
  0xac   :  { %v904_v51 = vperm.slane %v898_v46, %v2091_v17  ;;  %v896_v56 = vperm.slane %v888_v52, %v2091_v17  ;;  %v959_v8 = vrot.slane %v916_v53, 4  ;;  %v967_v39 = vrot.slane %v928_v20, 4 }
  0xad   :  { %v900_v54 = vsel %vm861_vm1, %v377_v34, %v899_v47  ;;  %v886_v55 = vsel %vm861_vm1, %v885_v48, %v317_v19  ;;  %v2136_v19 = vperm.slane %v1312_v32, 0  ;;  %v975_v32 = vrot.slane %v397_v5, 4 }
  0xae   :  { %v908_v58 = vperm.slane %v900_v54, %v2091_v17  ;;  %v933_v59 = vrot.slane %v904_v51, 4  ;;  %v892_v60 = vperm.slane %v886_v55, %v2091_v17  ;;  %v947_v63 = vrot.slane %v896_v56, 4 }
  0xb0   :  { %v945_v2 = vrot.slane %v908_v58, 4  ;;  %v934_v3 = vsel %vm861_vm1, %v933_v59, %v892_v60  ;;  %v935_v4 = vrot.slane %v892_v60, 4  ;;  %v948_v10 = vsel %vm861_vm1, %v908_v58, %v947_v63 }
  0xb1   :  { %v940_v9 = vperm.slane %v934_v3, %v2100_v29  ;;  %v457_v12 = vpop.f32.mrf.mxu0  ;;  %v956_v15 = vperm.slane %v948_v10, %v2100_v29 }
  0xb2   :  { %v936_v13 = vsel %vm861_vm1, %v904_v51, %v935_v4  ;;  %v946_v14 = vsel %vm861_vm1, %v945_v2, %v896_v56  ;;  %v985_v16 = vrot.slane %v457_v12, 4  ;;  %v437_v18 = vpop.f32.mrf.mxu3 }
  0xb3   :  { %v957_v11 = vrot.slane %v940_v9, 4  ;;  %v417_v22 = vpop.f32.mrf.mxu2  ;;  %v944_v23 = vperm.slane %v936_v13, %v2100_v29  ;;  %v952_v24 = vperm.slane %v946_v14, %v2100_v29  ;;  %v960_v25 = vsel %vm861_vm1, %v940_v9, %v959_v8 }
  0xb4   :  { %v969_v34 = vrot.slane %v956_v15, 4  ;;  %v986_v37 = vsel %vm861_vm1, %v985_v16, %v417_v22  ;;  %v972_v41 = vsel %vm861_vm1, %v956_v15, %v971_v27  ;;  %v2157_v38 = vmul.f32 %v2139_v21, %v960_v25 }
  0xb5   :  { %v958_v40 = vsel %vm861_vm1, %v957_v11, %v916_v53  ;;  %v961_v42 = vrot.slane %v944_v23, 4  ;;  %v964_v35 = vsel %vm861_vm1, %v944_v23, %v963_v33  ;;  %v965_v43 = vrot.slane %v952_v24, 4 }
  0xb6   :  { %v987_v44 = vrot.slane %v417_v22, 4  ;;  %v968_v45 = vsel %vm861_vm1, %v952_v24, %v967_v39  ;;  %v992_v46 = vperm.slane %v986_v37, %v2091_v17  ;;  %v973_v47 = vrot.slane %v437_v18, 4 }
  0xb7   :  { %v976_v48 = vsel %vm861_vm1, %v437_v18, %v975_v32  ;;  %v970_v49 = vsel %vm861_vm1, %v969_v34, %v932_v7  ;;  %v2166_v50 = vmul.f32 %v1317_v36, %v958_v40  ;;  %v962_v3 = vsel %vm861_vm1, %v961_v42, %v2125_v62 }
  0xb8   :  { %v988_v51 = vsel %vm861_vm1, %v457_v12, %v987_v44  ;;  %v984_v52 = vperm.slane %v976_v48, %v2091_v17  ;;  %v1021_v55 = vrot.slane %v992_v46, 4  ;;  %v974_v56 = vsel %vm861_vm1, %v973_v47, %v397_v5 }
  0xb9   :  { %v477_v53 = vpop.f32.mrf.mxu1  ;;  %v996_v54 = vperm.slane %v988_v51, %v2091_v17  ;;  %v980_v60 = vperm.slane %v974_v56, %v2091_v17  ;;  %v2176_v4 = vmul.f32 %v2136_v19, %v964_v35  ;;  %v966_v13 = vsel %vm861_vm1, %v965_v43, %v928_v20 }
  0xba   :  { %v999_v57 = vrot.slane %v477_v53, 4  ;;  %v537_v58 = vpop.f32.mrf.mxu0  ;;  %v1035_v63 = vrot.slane %v984_v52, 4  ;;  %v2190_v23 = vmul.f32 %v2146_v28, %v968_v45  ;;  %v2198_v37 = vmul.f32 %v2122_v61, %v962_v3 }
  0xbb   :  { %v497_v59 = vpop.f32.mrf.mxu2  ;;  %v1009_v0 = vrot.slane %v537_v58, 4  ;;  %v517_v2 = vpop.f32.mrf.mxu3  ;;  %v1033_v7 = vrot.slane %v996_v54, 4  ;;  %v1022_v9 = vsel %vm861_vm1, %v1021_v55, %v980_v60  ;;  %v1023_v5 = vrot.slane %v980_v60, 4 }
  0xbc   :  { %v1011_v1 = vrot.slane %v497_v59, 4  ;;  %v997_v8 = vrot.slane %v517_v2, 4  ;;  %v1036_v10 = vsel %vm861_vm1, %v996_v54, %v1035_v63  ;;  %v1000_v62 = vsel %vm861_vm1, %v517_v2, %v999_v57 }
  0xbd   :  { %v1010_v12 = vsel %vm861_vm1, %v1009_v0, %v497_v59  ;;  %v1034_v14 = vsel %vm861_vm1, %v1033_v7, %v984_v52  ;;  %v1024_v16 = vsel %vm861_vm1, %v992_v46, %v1023_v5  ;;  %v1028_v18 = vperm.slane %v1022_v9, %v2100_v29 }
  0xbe   :  { %v1012_v15 = vsel %vm861_vm1, %v537_v58, %v1011_v1  ;;  %v1016_v11 = vperm.slane %v1010_v12, %v2091_v17  ;;  %v1040_v24 = vperm.slane %v1034_v14, %v2100_v29  ;;  %v1044_v20 = vperm.slane %v1036_v10, %v2100_v29 }
  0xbf   :  { %v1020_v22 = vperm.slane %v1012_v15, %v2091_v17  ;;  %v998_v25 = vsel %vm861_vm1, %v997_v8, %v477_v53  ;;  %v1032_v27 = vperm.slane %v1024_v16, %v2100_v29  ;;  %v2201_v39 = vmul.f32 %v2144_v26, %v966_v13 }
  0xc0   :  { %v1045_v32 = vrot.slane %v1016_v11, 4  ;;  %v1004_v34 = vperm.slane %v998_v25, %v2091_v17  ;;  %v2204_v40 = vmul.f32 %v2148_v31, %v970_v49  ;;  %v1008_v42 = vperm.slane %v1000_v62, %v2091_v17 }
  0xc1   :  { %v1057_v33 = vrot.slane %v1020_v22, 4  ;;  %v2208_v35 = vmul.f32 %v2151_v30, %v972_v41  ;;  %v1071_v43 = vrot.slane %v1028_v18, 4  ;;  %v1083_v46 = vrot.slane %v1044_v20, 4 }
  0xc2   :  { %v1046_v44 = vsel %vm861_vm1, %v1045_v32, %v1004_v34  ;;  %v1047_v45 = vrot.slane %v1004_v34, 4  ;;  %v1059_v51 = vrot.slane %v1008_v42, 4  ;;  %v1075_v52 = vrot.slane %v1032_v27, 4 }
  0xc3   :  { %v1052_v47 = vperm.slane %v1046_v44, %v2100_v29  ;;  %v1058_v48 = vsel %vm861_vm1, %v1057_v33, %v1008_v42  ;;  %v1079_v53 = vrot.slane %v1040_v24, 4 }
  0xc4   :  { %v1048_v49 = vsel %vm861_vm1, %v1016_v11, %v1047_v45  ;;  %v1064_v54 = vperm.slane %v1058_v48, %v2100_v29  ;;  %v1060_v41 = vsel %vm861_vm1, %v1020_v22, %v1059_v51 }
  0xc5   :  { %v1056_v55 = vperm.slane %v1048_v49, %v2100_v29  ;;  %v1069_v56 = vrot.slane %v1052_v47, 4  ;;  %v1072_v57 = vsel %vm861_vm1, %v1052_v47, %v1071_v43  ;;  %v1068_v58 = vperm.slane %v1060_v41, %v2100_v29 }
  0xc6   :  { %v1077_v59 = vrot.slane %v1064_v54, 4  ;;  %v1080_v60 = vsel %vm861_vm1, %v1064_v54, %v1079_v53  ;;  %v2221_v63 = vmul.f32 %v2139_v21, %v1072_v57 }
  0xc7   :  { %v1070_v0 = vsel %vm861_vm1, %v1069_v56, %v1028_v18  ;;  %v1073_v1 = vrot.slane %v1056_v55, 4  ;;  %v1076_v2 = vsel %vm861_vm1, %v1056_v55, %v1075_v52  ;;  %v2226_v3 = vmul.f32 %v2146_v28, %v1080_v60 }
  0xc8   :  { %v1078_v7 = vsel %vm861_vm1, %v1077_v59, %v1040_v24  ;;  %v1081_v8 = vrot.slane %v1068_v58, 4  ;;  %v1084_v9 = vsel %vm861_vm1, %v1068_v58, %v1083_v46  ;;  %v2232_v5 = vmul.f32 %v1317_v36, %v1070_v0 }
  0xc9   :  { %v1074_v21 = vsel %vm861_vm1, %v1073_v1, %v1032_v27  ;;  %v2236_v10 = vmul.f32 %v2136_v19, %v1076_v2  ;;  %v2239_v12 = vmul.f32 %v2144_v26, %v1078_v7  ;;  %v2242_v28 = vmul.f32 %v2151_v30, %v1084_v9 }
  0xca   :  { %v1082_v13 = vsel %vm861_vm1, %v1081_v8, %v1044_v20  ;;  %v2246_v14 = vmul.f32 %v2122_v61, %v1074_v21  ;;  %v1349_v6 = vmax.f32 %v2166_v50, %v2232_v5  ;;  %v1356_v36 = vmax.f32 %v2157_v38, %v2221_v63 }
  0xcb   :  { %v2253_v19 = vmul.f32 %v2148_v31, %v1082_v13  ;;  %v1370_v26 = vmax.f32 %v2176_v4, %v2236_v10  ;;  %v1377_v30 = vmax.f32 %v2201_v39, %v2239_v12  ;;  %v1384_v15 = vmax.f32 %v2190_v23, %v2226_v3  ;;  %v617_v13 = vpop.f32.mrf.mxu0 }
  0xcc   :  { %v1350_v61 = vrot.slane %v1349_v6, 4  ;;  %v1357_v62 = vrot.slane %v1356_v36, 4  ;;  %v1363_v16 = vmax.f32 %v2198_v37, %v2246_v14  ;;  %v1398_v18 = vmax.f32 %v2208_v35, %v2242_v28 }
  0xcd   :  { %v1371_v11 = vrot.slane %v1370_v26, 4  ;;  %v1378_v31 = vrot.slane %v1377_v30, 4  ;;  %v1385_v22 = vrot.slane %v1384_v15, 4  ;;  %v1391_v24 = vmax.f32 %v2204_v40, %v2253_v19 }
  0xce   :  { %v1351_v20 = vmax.f32 %v1349_v6, %v1350_v61  ;;  %v1358_v25 = vmax.f32 %v1356_v36, %v1357_v62  ;;  %v1364_v27 = vrot.slane %v1363_v16, 4  ;;  %v1399_v32 = vrot.slane %v1398_v18, 4 }
  0xcf   :  { %v1372_v33 = vmax.f32 %v1370_v26, %v1371_v11  ;;  %v1379_v34 = vmax.f32 %v1377_v30, %v1378_v31  ;;  %v1386_v42 = vmax.f32 %v1384_v15, %v1385_v22  ;;  %v1392_v43 = vrot.slane %v1391_v24, 4  ;;  %v577_v15 = vpop.f32.mrf.mxu2  ;;  %v557_v31 = vpop.f32.mrf.mxu1 }
  0xd0   :  { %v1352_v44 = vrot.slane %v1351_v20, 2  ;;  %v1359_v45 = vrot.slane %v1358_v25, 2  ;;  %v1365_v46 = vmax.f32 %v1363_v16, %v1364_v27  ;;  %v1400_v47 = vmax.f32 %v1398_v18, %v1399_v32  ;;  %v597_v16 = vpop.f32.mrf.mxu3 }
  0xd1   :  { %v1373_v48 = vrot.slane %v1372_v33, 2  ;;  %v1380_v51 = vrot.slane %v1379_v34, 2  ;;  %v1387_v52 = vrot.slane %v1386_v42, 2  ;;  %v1393_v53 = vmax.f32 %v1391_v24, %v1392_v43 }
  0xd2   :  { %v1353_v49 = vmax.f32 %v1351_v20, %v1352_v44  ;;  %v1360_v54 = vmax.f32 %v1358_v25, %v1359_v45  ;;  %v1366_v55 = vrot.slane %v1365_v46, 2  ;;  %v1401_v41 = vrot.slane %v1400_v47, 2 }
  0xd3   :  { %v1374_v56 = vmax.f32 %v1372_v33, %v1373_v48  ;;  %v1381_v57 = vmax.f32 %v1379_v34, %v1380_v51  ;;  %v1388_v58 = vmax.f32 %v1386_v42, %v1387_v52  ;;  %v1394_v59 = vrot.slane %v1393_v53, 2 }
  0xd4   :  { %v1354_v60 = vrot.slane %v1353_v49, 1  ;;  %v1367_v0 = vmax.f32 %v1365_v46, %v1366_v55  ;;  %v1402_v1 = vmax.f32 %v1400_v47, %v1401_v41  ;;  %v1361_v2 = vrot.slane %v1360_v54, 1 }
  0xd5   :  { %v1375_v7 = vrot.slane %v1374_v56, 1  ;;  %v1395_v8 = vmax.f32 %v1393_v53, %v1394_v59  ;;  %v1382_v21 = vrot.slane %v1381_v57, 1  ;;  %v1389_v6 = vrot.slane %v1388_v58, 1 }
  0xd6   :  { %v1368_v9 = vrot.slane %v1367_v0, 1  ;;  %v1355_v36 = vmax.f32 %v1353_v49, %v1354_v60  ;;  %v1403_v30 = vrot.slane %v1402_v1, 1  ;;  %v1362_v61 = vmax.f32 %v1360_v54, %v1361_v2 }
  0xd7   :  { %v1396_v26 = vrot.slane %v1395_v8, 1  ;;  %v1376_v62 = vmax.f32 %v1374_v56, %v1375_v7  ;;  %v1383_v11 = vmax.f32 %v1381_v57, %v1382_v21  ;;  %v1390_v22 = vmax.f32 %v1388_v58, %v1389_v6  ;;  %v657_v55 = vpop.f32.mrf.mxu2 }
  0xd8   :  { %v1369_v18 = vmax.f32 %v1367_v0, %v1368_v9  ;;  %v1087_v24 = vrot.slane %v557_v31, 4  ;;  %v1097_v20 = vrot.slane %v617_v13, 4  ;;  %v2269_v27 = vmax.f32 %v1402_v1, %v1403_v30  ;;  %v677_v58 = vpop.f32.mrf.mxu3  ;;  %v637_v1 = vpop.f32.mrf.mxu1 }
  0xd9   :  { %v2267_v25 = vmax.f32 %v1395_v8, %v1396_v26  ;;  %v1406_v32 = vsub.f32 %v2232_v5, %v1355_v36  ;;  %v1099_v33 = vrot.slane %v577_v15, 4  ;;  %v1405_v34 = vsub.f32 %v2166_v50, %v1355_v36 }
  0xda   :  { %v1407_v42 = vsub.f32 %v2157_v38, %v1362_v61  ;;  %v1408_v43 = vsub.f32 %v2221_v63, %v1362_v61  ;;  %v1411_v44 = vsub.f32 %v2176_v4, %v1376_v62  ;;  %v1409_v45 = vsub.f32 %v2198_v37, %v1369_v18 }
  0xdb   :  { %v1410_v46 = vsub.f32 %v2246_v14, %v1369_v18  ;;  %v1412_v47 = vsub.f32 %v2236_v10, %v1376_v62  ;;  %v1413_v48 = vsub.f32 %v2201_v39, %v1383_v11  ;;  %v1414_v51 = vsub.f32 %v2239_v12, %v1383_v11  ;;  %v697_v14 = vpop.f32.mrf.mxu0 }
  0xdc   :  { %v1415_v5 = vsub.f32 %v2190_v23, %v1390_v22  ;;  %v1416_v50 = vsub.f32 %v2226_v3, %v1390_v22  ;;  %v1098_v38 = vsel %vm861_vm1, %v1097_v20, %v577_v15  ;;  %v1417_v63 = vsub.f32 %v2204_v40, %v2267_v25 }
  0xdd   :  { %v1418_v4 = vsub.f32 %v2253_v19, %v2267_v25  ;;  %v1419_v37 = vsub.f32 %v2208_v35, %v2269_v27  ;;  %v1423_v10 = vmul.f32 1.442695, %v1406_v32  ;;  %v1420_v39 = vsub.f32 %v2242_v28, %v2269_v27 }
  0xde   :  { %v1421_v12 = vmul.f32 1.442695, %v1405_v34  ;;  %v1425_v23 = vmul.f32 1.442695, %v1407_v42  ;;  %v1100_v3 = vsel %vm861_vm1, %v617_v13, %v1099_v33  ;;  %v1427_v52 = vmul.f32 1.442695, %v1408_v43 }
  0xdf   :  { %v1429_v53 = vmul.f32 1.442695, %v1409_v45  ;;  %v1104_v49 = vperm.slane %v1098_v38, %v2091_v17  ;;  %v1085_v54 = vrot.slane %v597_v16, 4  ;;  %v1431_v41 = vmul.f32 1.442695, %v1410_v46 }
  0xe0   :  { %v1433_v19 = vmul.f32 1.442695, %v1411_v44  ;;  %v1088_v56 = vsel %vm861_vm1, %v597_v16, %v1087_v24  ;;  %v1121_v57 = vrot.slane %v697_v14, 4  ;;  %1827 = vpow2.f32 %v1423_v10 }
  0xe1   :  { %v1435_v59 = vmul.f32 1.442695, %v1412_v47  ;;  %v1108_v60 = vperm.slane %v1100_v3, %v2091_v17  ;;  %v1086_v0 = vsel %vm861_vm1, %v1085_v54, %v557_v31  ;;  %v1437_v2 = vmul.f32 1.442695, %v1413_v48 }
  0xe2   :  { %v1133_v7 = vrot.slane %v1104_v49, 4  ;;  %v1092_v8 = vperm.slane %v1086_v0, %v2091_v17  ;;  %v1122_v9 = vsel %vm861_vm1, %v1121_v57, %v657_v55  ;;  %v1096_v21 = vperm.slane %v1088_v56, %v2091_v17 }
  0xe3   :  { %v1123_v13 = vrot.slane %v657_v55, 4  ;;  %v1128_v6 = vperm.slane %v1122_v9, %v2091_v17  ;;  %v1109_v36 = vrot.slane %v677_v58, 4  ;;  %1829 = vpow2.f32 %v1427_v52  ;;  %v2344_v0 = vpop.f32.mrf.mxu0 }
  0xe4   :  { %v1439_v26 = vmul.f32 1.442695, %v1414_v51  ;;  %v2301_v30 = vmul.f32 1.442695, %v1415_v5  ;;  %v1111_v15 = vrot.slane %v637_v1, 4  ;;  %v1145_v62 = vrot.slane %v1108_v60, 4 }
  0xe5   :  { %v1443_v61 = vmul.f32 1.442695, %v1416_v50  ;;  %v1135_v16 = vrot.slane %v1092_v8, 4  ;;  %v1124_v18 = vsel %vm861_vm1, %v697_v14, %v1123_v13  ;;  %1831 = vpow2.f32 %v1431_v41 }
  0xe6   :  { %v1132_v11 = vperm.slane %v1124_v18, %v2091_v17  ;;  %v1157_v31 = vrot.slane %v1128_v6, 4  ;;  %v1110_v22 = vsel %vm861_vm1, %v1109_v36, %v637_v1  ;;  %v2306_v24 = vpop.eup %1827  ;;  %1833 = vpow2.f32 %v1435_v59  ;;  %v2342_v59 = vpop.f32.mrf.mxu1 }
  0xe7   :  { %v1447_v20 = vmul.f32 1.442695, %v1418_v4  ;;  %v1134_v32 = vsel %vm861_vm1, %v1133_v7, %v1092_v8  ;;  %v1147_v33 = vrot.slane %v1096_v21, 4  ;;  %v1112_v42 = vsel %vm861_vm1, %v677_v58, %v1111_v15  ;;  %v2346_v1 = vpop.f32.mrf.mxu2 }
  0xe8   :  { %v1169_v34 = vrot.slane %v1132_v11, 4  ;;  %v1116_v43 = vperm.slane %v1110_v22, %v2091_v17  ;;  %1835 = vpow2.f32 %v1421_v12  ;;  %v1136_v44 = vsel %vm861_vm1, %v1104_v49, %v1135_v16  ;;  %v1715_v22 = vld [vmem:[#allocation7 + $0x70] sm:$0xff] }
  0xe9   :  { %v1146_v45 = vsel %vm861_vm1, %v1145_v62, %v1096_v21  ;;  %v1120_v46 = vperm.slane %v1112_v42, %v2091_v17  ;;  %1837 = vpow2.f32 %v1425_v23  ;;  %v2314_v47 = vpop.eup %1829  ;;  %v1140_v48 = vperm.slane %v1134_v32, %v2100_v29 }
  0xea   :  { %v1158_v51 = vsel %vm861_vm1, %v1157_v31, %v1116_v43  ;;  %v1159_v5 = vrot.slane %v1116_v43, 4  ;;  %1839 = vpow2.f32 %v1429_v53  ;;  %v1148_v50 = vsel %vm861_vm1, %v1108_v60, %v1147_v33 }
  0xeb   :  { %v1170_v38 = vsel %vm861_vm1, %v1169_v34, %v1120_v46  ;;  %v1171_v4 = vrot.slane %v1120_v46, 4  ;;  %1841 = vpow2.f32 %v1433_v19  ;;  %v2320_v10 = vpop.eup %1831  ;;  %v1144_v14 = vperm.slane %v1136_v44, %v2100_v29  ;;  %v1714_v46 = vld [vmem:[#allocation7 + $0x68] sm:$0xff] }
  0xec   :  { %v1152_v12 = vperm.slane %v1146_v45, %v2100_v29  ;;  %v1160_v23 = vsel %vm861_vm1, %v1128_v6, %v1159_v5  ;;  %v1164_v3 = vperm.slane %v1158_v51, %v2100_v29  ;;  %v2326_v52 = vpop.eup %1833  ;;  %1843 = vpow2.f32 %v1439_v26  ;;  %v1716_v6 = vld [vmem:[#allocation7 + $0x78] sm:$0xff] }
  0xed   :  { %v1451_v53 = vmul.f32 1.442695, %v1420_v39  ;;  %v1172_v49 = vsel %vm861_vm1, %v1132_v11, %v1171_v4  ;;  %v1176_v54 = vperm.slane %v1170_v38, %v2100_v29  ;;  %v1445_v41 = vmul.f32 1.442695, %v1417_v63  ;;  %1744 = vmatpush.msra.mxu1 %v1716_v6  ;;  %v1713_v38 = vld [vmem:[#allocation7 + $0x60] sm:$0xff] }
  0xee   :  { %v1836_v55 = vpop.eup %1835  ;;  %v1156_v19 = vperm.slane %v1148_v50, %v2100_v29  ;;  %v1168_v56 = vperm.slane %v1160_v23, %v2100_v29  ;;  %1845 = vpow2.f32 %v1437_v2  ;;  %v1449_v28 = vmul.f32 1.442695, %v1419_v37  ;;  %v2350_v37 = vpop.f32.mrf.mxu3 }
  0xef   :  { %v1838_v57 = vpop.eup %1837  ;;  %1847 = vpow2.f32 %v1443_v61  ;;  %v1183_v39 = vrot.slane %v1140_v48, 4  ;;  %v1180_v58 = vperm.slane %v1172_v49, %v2100_v29  ;;  %v1187_v40 = vrot.slane %v1144_v14, 4  ;;  %1745 = vmatpush.msra.mxu1 %v1715_v22 }
  0xf0   :  { %v1840_v60 = vpop.eup %1839  ;;  %1849 = vpow2.f32 %v1447_v20  ;;  %v1191_v25 = vrot.slane %v1152_v12, 4  ;;  %v1181_v63 = vrot.slane %v1164_v3, 4  ;;  %v1189_v7 = vrot.slane %v1176_v54, 4 }
  0xf1   :  { %v1842_v2 = vpop.eup %1841  ;;  %1851 = vpow2.f32 %v1451_v53  ;;  %v1453_v35 = vadd.f32 %v1836_v55, %v2306_v24  ;;  %v1460_v27 = vadd.f32 %v1838_v57, %v2314_v47  ;;  %v1195_v8 = vrot.slane %v1156_v19, 4  ;;  %1746 = vmatpush.msra.mxu1 %v1714_v46 }
  0xf2   :  { %v1185_v9 = vrot.slane %v1168_v56, 4  ;;  %v1467_v21 = vadd.f32 %v1840_v60, %v2320_v10  ;;  %v1199_v13 = vrot.slane %v2342_v59, 4  ;;  %v2354_v36 = vpop.eup %1843  ;;  %v1184_v26 = vsel %vm861_vm1, %v1164_v3, %v1183_v39  ;;  %v1712_v3 = vld [vmem:[#allocation7 + $0x58] sm:$0xff] }
  0xf3   :  { %v1193_v15 = vrot.slane %v1180_v58, 4  ;;  %v1474_v61 = vadd.f32 %v1842_v2, %v2326_v52  ;;  %v1209_v62 = vrot.slane %v2344_v0, 4  ;;  %v1182_v18 = vsel %vm861_vm1, %v1181_v63, %v1140_v48  ;;  %1747 = vmatpush.msra.mxu1 %v1713_v38 }
  0xf4   :  { %v1846_v16 = vpop.eup %1845  ;;  %v1188_v11 = vsel %vm861_vm1, %v1168_v56, %v1187_v40  ;;  %v1192_v31 = vsel %vm861_vm1, %v1176_v54, %v1191_v25  ;;  %1853 = vpow2.f32 %v2301_v30  ;;  %v1190_v32 = vsel %vm861_vm1, %v1189_v7, %v1152_v12  ;;  %v1711_v40 = vld [vmem:[#allocation7 + $0x50] sm:$0xff] }
  0xf5   :  { %v2363_v20 = vpop.eup %1847  ;;  %1855 = vpow2.f32 %v1445_v41  ;;  %v1454_v33 = vrot.slane %v1453_v35, 4  ;;  %v1461_v34 = vrot.slane %v1460_v27, 4  ;;  %v1186_v43 = vsel %vm861_vm1, %v1185_v9, %v1144_v14  ;;  %v797_v41 = vpop.f32.mrf.mxu1  ;;  %1748 = vmatpush.msra.mxu1 %v1712_v3 }
  0xf6   :  { %v2366_v42 = vpop.eup %1849  ;;  %v2370_v44 = vsel %vm861_vm1, %v1180_v58, %v1195_v8  ;;  %1857 = vpow2.f32 %v1449_v28  ;;  %v1468_v45 = vrot.slane %v1467_v21, 4  ;;  %v2375_v48 = vsel %vm861_vm1, %v1193_v15, %v1156_v19  ;;  %v857_v58 = vpop.f32.mrf.mxu0 }
  0xf7   :  { %v2372_v30 = vpop.eup %1851  ;;  %v1475_v51 = vrot.slane %v1474_v61, 4  ;;  %v2378_v5 = vadd.f32 %v1846_v16, %v2354_v36  ;;  %v2380_v50 = vmul.f32 %v1836_v55, %v1182_v18  ;;  %v2382_v4 = vmul.f32 %v1838_v57, %v1184_v26  ;;  %1749 = vmatpush.msra.mxu1 %v1711_v40 }
  0xf8   :  { %v2384_v14 = vmul.f32 %v1840_v60, %v1186_v43  ;;  %v2386_v12 = vmul.f32 %v1842_v2, %v1188_v11  ;;  %v1210_v23 = vsel %vm861_vm1, %v1209_v62, %v2346_v1  ;;  %v2390_v53 = vadd.f32 %v1454_v33, %v1453_v35  ;;  %v817_v60 = vpop.f32.mrf.mxu2  ;;  %v837_v35 = vpop.f32.mrf.mxu3  ;;  %v1709_v11 = vld [vmem:[#allocation7 + $0x40] sm:$0xff] }
  0xf9   :  { %v2392_v49 = vadd.f32 %v1461_v34, %v1460_v27  ;;  %v2394_v54 = vmul.f32 %v1846_v16, %v1190_v32  ;;  %v1211_v55 = vrot.slane %v2346_v1, 4  ;;  %v2397_v56 = vadd.f32 %v1468_v45, %v1467_v21 }
  0xfa   :  { %v1854_v19 = vpop.eup %1853  ;;  %v1216_v57 = vperm.slane %v1210_v23, %v2091_v17  ;;  %v1197_v28 = vrot.slane %v2350_v37, 4  ;;  %v1200_v39 = vsel %vm861_vm1, %v2350_v37, %v1199_v13  ;;  %v2405_v63 = vadd.f32 %v1475_v51, %v1474_v61  ;;  %v1710_v13 = vld [vmem:[#allocation7 + $0x48] sm:$0xff] }
  0xfb   :  { %v2403_v25 = vpop.eup %1855  ;;  %v1482_v1 = vrot.slane %v2378_v5, 4  ;;  %v1212_v2 = vsel %vm861_vm1, %v2344_v0, %v1211_v55  ;;  %v1208_v7 = vperm.slane %v1200_v39, %v2091_v17  ;;  %v1223_v21 = vrot.slane %v797_v41, 4  ;;  %1750 = vmatpush.msra.mxu1 %v1710_v13 }
  0xfc   :  { %v1858_v27 = vpop.eup %1857  ;;  %v1220_v8 = vperm.slane %v1212_v2, %v2091_v17  ;;  %v1245_v37 = vrot.slane %v1216_v57, 4  ;;  %v1198_v9 = vsel %vm861_vm1, %v1197_v28, %v2342_v59  ;;  %v2415_v6 = vadd.f32 %v1854_v19, %v2363_v20 }
  0xfd   :  { %v1204_v26 = vperm.slane %v1198_v9, %v2091_v17  ;;  %v1233_v15 = vrot.slane %v857_v58, 4  ;;  %v1235_v0 = vrot.slane %v817_v60, 4  ;;  %v2420_v61 = vadd.f32 %v2403_v25, %v2366_v42  ;;  %1751 = vmatpush.msra.mxu1 %v1709_v11 }
  0xfe   :  { %v2422_v62 = vmul.f32 %v1854_v19, %v1192_v31  ;;  %v1257_v16 = vrot.slane %v1220_v8, 4  ;;  %v1221_v18 = vrot.slane %v837_v35, 4  ;;  %v1259_v32 = vrot.slane %v1208_v7, 4  ;;  %v1708_v31 = vld [vmem:[#allocation7 + $0x38] sm:$0xff] }
  0xff   :  { %v1246_v59 = vsel %vm861_vm1, %v1245_v37, %v1204_v26  ;;  %v1247_v22 = vrot.slane %v1204_v26, 4  ;;  %v1234_v33 = vsel %vm861_vm1, %v1233_v15, %v817_v60  ;;  %v1236_v45 = vsel %vm861_vm1, %v857_v58, %v1235_v0  ;;  %v1707_v58 = vld [vmem:[#allocation7 + $0x30] sm:$0xff]  ;;  %1752 = vmatpush.msra.mxu1 %v1708_v31 }
 0x100   :  { %v1252_v34 = vperm.slane %v1246_v59, %v2100_v29  ;;  %v1258_v43 = vsel %vm861_vm1, %v1257_v16, %v1208_v7  ;;  %v1224_v46 = vsel %vm861_vm1, %v837_v35, %v1223_v21  ;;  %v1240_v23 = vperm.slane %v1234_v33, %v2091_v17  ;;  %v1706_v21 = vld [vmem:[#allocation7 + $0x28] sm:$0xff] }
 0x101   :  { %v1248_v51 = vsel %vm861_vm1, %v1216_v57, %v1247_v22  ;;  %v1264_v38 = vperm.slane %v1258_v43, %v2100_v29  ;;  %v1244_v3 = vperm.slane %v1236_v45, %v2091_v17  ;;  %v1456_v55 = vrot.slane %v2390_v53, 2  ;;  %1753 = vmatpush.msra.mxu1 %v1707_v58  ;;  %v1704_v45 = vld [vmem:[#allocation7 + $0x18] sm:$0xff] }
 0x102   :  { %v1463_v19 = vrot.slane %v2392_v49, 2  ;;  %v1256_v28 = vperm.slane %v1248_v51, %v2100_v29  ;;  %v1222_v39 = vsel %vm861_vm1, %v1221_v18, %v797_v41  ;;  %v2439_v60 = vadd.f32 %v1482_v1, %v2378_v5  ;;  %v1705_v18 = vld [vmem:[#allocation7 + $0x20] sm:$0xff] }
 0x103   :  { %v1269_v57 = vrot.slane %v1240_v23, 4  ;;  %v1281_v40 = vrot.slane %v1244_v3, 4  ;;  %v1228_v2 = vperm.slane %v1222_v39, %v2091_v17  ;;  %v1489_v7 = vrot.slane %v2415_v6, 4  ;;  %1754 = vmatpush.msra.mxu1 %v1706_v21 }
 0x104   :  { %v2444_v35 = vadd.f32 %v1858_v27, %v2372_v30  ;;  %v1295_v37 = vrot.slane %v1252_v34, 4  ;;  %v1232_v9 = vperm.slane %v1224_v46, %v2091_v17  ;;  %v1260_v41 = vsel %vm861_vm1, %v1220_v8, %v1259_v32 }
 0x105   :  { %v1303_v13 = vrot.slane %v1264_v38, 4  ;;  %v1270_v5 = vsel %vm861_vm1, %v1269_v57, %v1228_v2  ;;  %v1271_v1 = vrot.slane %v1228_v2, 4  ;;  %v1299_v26 = vrot.slane %v1256_v28, 4  ;;  %1755 = vmatpush.msra.mxu1 %v1705_v18 }
 0x106   :  { %v1276_v15 = vperm.slane %v1270_v5, %v2100_v29  ;;  %v1282_v0 = vsel %vm861_vm1, %v1281_v40, %v1232_v9  ;;  %v1283_v16 = vrot.slane %v1232_v9, 4  ;;  %v2453_v11 = vmul.f32 %v2403_v25, %v2375_v48  ;;  %v1702_v9 = vld [vmem:[#allocation7 + $0x8] sm:$0xff] }
 0x107   :  { %v2456_v17 = vmul.f32 %v1858_v27, %v2370_v44  ;;  %v1272_v8 = vsel %vm861_vm1, %v1240_v23, %v1271_v1  ;;  %v1288_v59 = vperm.slane %v1282_v0, %v2100_v29  ;;  %v1268_v46 = vperm.slane %v1260_v41, %v2100_v29  ;;  %1756 = vmatpush.msra.mxu1 %v1704_v45 }
 0x108   :  { %v1280_v22 = vperm.slane %v1272_v8, %v2100_v29  ;;  %v1284_v32 = vsel %vm861_vm1, %v1244_v3, %v1283_v16  ;;  %v1293_v33 = vrot.slane %v1276_v15, 4  ;;  %v1296_v43 = vsel %vm861_vm1, %v1276_v15, %v1295_v37  ;;  %v1703_v3 = vld [vmem:[#allocation7 + $0x10] sm:$0xff] }
 0x109   :  { %v1301_v48 = vrot.slane %v1288_v59, 4  ;;  %v1304_v25 = vsel %vm861_vm1, %v1288_v59, %v1303_v13  ;;  %v1512_v44 = vmul.f32 %v2314_v47, %v1296_v43  ;;  %v1457_v39 = vadd.f32 %v1456_v55, %v2390_v53  ;;  %1757 = vmatpush.msra.mxu1 %v1703_v3 }
 0x10a   :  { %v1294_v27 = vsel %vm861_vm1, %v1293_v33, %v1252_v34  ;;  %v1297_v31 = vrot.slane %v1280_v22, 4  ;;  %v1300_v51 = vsel %vm861_vm1, %v1280_v22, %v1299_v26  ;;  %v1520_v23 = vmul.f32 %v2363_v20, %v1304_v25 }
 0x10b   :  { %v1292_v58 = vperm.slane %v1284_v32, %v2100_v29  ;;  %v1302_v57 = vsel %vm861_vm1, %v1301_v48, %v1264_v38  ;;  %v1510_v40 = vmul.f32 %v2306_v24, %v1294_v27  ;;  %v1464_v47 = vadd.f32 %v1463_v19, %v2392_v49  ;;  %1758 = vmatpush.msra.mxu1 %v1702_v9 }
 0x10c   :  { %v1298_v2 = vsel %vm861_vm1, %v1297_v31, %v1256_v28  ;;  %v1516_v34 = vmul.f32 %v2326_v52, %v1300_v51  ;;  %v1518_v37 = vmul.f32 %v2354_v36, %v1302_v57  ;;  %v1490_v20 = vadd.f32 %v1489_v7, %v2415_v6  ;;  %v1701_v52 = vld [vmem:[#allocation7] sm:$0xff] }
 0x10d   :  { %v1514_v53 = vmul.f32 %v2320_v10, %v1298_v2  ;;  %v1525_v29 = vadd.f32 %v1510_v40, %v2380_v50  ;;  %v1532_v38 = vadd.f32 %v1512_v44, %v2382_v4  ;;  %v1307_v24 = vrot.slane %v1268_v46, 4  ;;  %1759 = vmatpush.msra.mxu1 %v1701_v52 }
 0x10e   :  { %v1546_v55 = vadd.f32 %v1516_v34, %v2386_v12  ;;  %v1553_v49 = vadd.f32 %v1518_v37, %v2394_v54  ;;  %v1560_v19 = vadd.f32 %v1520_v23, %v2422_v62  ;;  %v1305_v28 = vrot.slane %v1292_v58, 4 }
 0x10f   :  { %v1526_v36 = vrot.slane %v1525_v29, 4  ;;  %v1533_v21 = vrot.slane %v1532_v38, 4  ;;  %v1539_v6 = vadd.f32 %v1514_v53, %v2384_v14  ;;  %v1470_v50 = vrot.slane %v2397_v56, 2 }
 0x110   :  { %v1547_v10 = vrot.slane %v1546_v55, 4  ;;  %v1554_v7 = vrot.slane %v1553_v49, 4  ;;  %v1477_v4 = vrot.slane %v2405_v63, 2  ;;  %v1561_v5 = vrot.slane %v1560_v19, 4 }
 0x111   :  { %v1527_v41 = vadd.f32 %v1526_v36, %v1525_v29  ;;  %v1534_v13 = vadd.f32 %v1533_v21, %v1532_v38  ;;  %v1540_v12 = vrot.slane %v1539_v6, 4  ;;  %v1465_v54 = vrot.slane %v1464_v47, 1 }
 0x112   :  { %v1484_v62 = vrot.slane %v2439_v60, 2  ;;  %v1491_v1 = vrot.slane %v1490_v20, 2  ;;  %v1458_v26 = vrot.slane %v1457_v39, 1  ;;  %v1306_v15 = vsel %vm861_vm1, %v1305_v28, %v1268_v46 }
 0x113   :  { %v1308_v14 = vsel %vm861_vm1, %v1292_v58, %v1307_v24  ;;  %v1541_v0 = vadd.f32 %v1540_v12, %v1539_v6  ;;  %v1555_v16 = vadd.f32 %v1554_v7, %v1553_v49  ;;  %v1528_v18 = vrot.slane %v1527_v41, 2 }
 0x114   :  { %v1496_v8 = vrot.slane %v2420_v61, 4  ;;  %v1503_v59 = vrot.slane %v2444_v35, 4  ;;  %v1548_v22 = vadd.f32 %v1547_v10, %v1546_v55  ;;  %v1535_v32 = vrot.slane %v1534_v13, 2 }
 0x115   :  { %v1562_v33 = vadd.f32 %v1561_v5, %v1560_v19  ;;  %v1471_v43 = vadd.f32 %v1470_v50, %v2397_v56  ;;  %v1478_v45 = vadd.f32 %v1477_v4, %v2405_v63  ;;  %v1542_v25 = vrot.slane %v1541_v0, 2 }
 0x116   :  { %v1497_v48 = vadd.f32 %v1496_v8, %v2420_v61  ;;  %v1504_v46 = vadd.f32 %v1503_v59, %v2444_v35  ;;  %v1549_v44 = vrot.slane %v1548_v22, 2  ;;  %v1522_v27 = vmul.f32 %v2366_v42, %v1306_v15 }
 0x117   :  { %v1524_v31 = vmul.f32 %v2372_v30, %v1308_v14  ;;  %v1485_v51 = vadd.f32 %v1484_v62, %v2439_v60  ;;  %v1556_v23 = vrot.slane %v1555_v16, 2  ;;  %v1529_v3 = vadd.f32 %v1528_v18, %v1527_v41 }
 0x118   :  { %v1492_v58 = vadd.f32 %v1491_v1, %v1490_v20  ;;  %v1498_v57 = vrot.slane %v1497_v48, 2  ;;  %v1505_v40 = vrot.slane %v1504_v46, 2  ;;  %v2499_v56 = vadd.f32 %v1458_v26, %v1457_v39 }
 0x119   :  { %v2501_v63 = vadd.f32 %v1465_v54, %v1464_v47  ;;  %v1472_v61 = vrot.slane %v1471_v43, 1  ;;  %v1563_v2 = vrot.slane %v1562_v33, 2  ;;  %v1536_v35 = vadd.f32 %v1535_v32, %v1534_v13 }
 0x11a   :  { %v1479_v34 = vrot.slane %v1478_v45, 1  ;;  %v1543_v37 = vadd.f32 %v1542_v25, %v1541_v0  ;;  %v1550_v9 = vadd.f32 %v1549_v44, %v1548_v22  ;;  %v1499_v42 = vadd.f32 %v1498_v57, %v1497_v48 }
 0x11b   :  { %v1557_v53 = vadd.f32 %v1556_v23, %v1555_v16  ;;  %v1567_v30 = vadd.f32 %v1522_v27, %v2453_v11  ;;  %v1574_v60 = vadd.f32 %v1524_v31, %v2456_v17  ;;  %v1486_v29 = vrot.slane %v1485_v51, 1 }
 0x11c   :  { %v1493_v20 = vrot.slane %v1492_v58, 1  ;;  %v1506_v38 = vadd.f32 %v1505_v40, %v1504_v46  ;;  %v1530_v24 = vrot.slane %v1529_v3, 1  ;;  %v1564_v39 = vadd.f32 %v1563_v2, %v1562_v33 }
 0x11d   :  { %v1568_v55 = vrot.slane %v1567_v30, 4  ;;  %v1575_v47 = vrot.slane %v1574_v60, 4  ;;  %1859 = vrcp.f32 %v2499_v56  ;;  %v1537_v49 = vrot.slane %v1536_v35, 1 }
 0x11e   :  { %v2506_v19 = vadd.f32 %v1472_v61, %v1471_v43  ;;  %v1544_v52 = vrot.slane %v1543_v37, 1  ;;  %v1551_v28 = vrot.slane %v1550_v9, 1  ;;  %v1500_v36 = vrot.slane %v1499_v42, 1 }
 0x11f   :  { %v1558_v21 = vrot.slane %v1557_v53, 1  ;;  %v1569_v6 = vadd.f32 %v1568_v55, %v1567_v30  ;;  %v1576_v11 = vadd.f32 %v1575_v47, %v1574_v60  ;;  %v2508_v10 = vadd.f32 %v1479_v34, %v1478_v45 }
 0x120   :  { %v2510_v17 = vadd.f32 %v1486_v29, %v1485_v51  ;;  %v1507_v7 = vrot.slane %v1506_v38, 1  ;;  %1861 = vrcp.f32 %v2501_v63  ;;  %v2513_v50 = vadd.f32 %v1493_v20, %v1492_v58 }
 0x121   :  { %v2515_v4 = vadd.f32 %v1530_v24, %v1529_v3  ;;  %v1565_v41 = vrot.slane %v1564_v39, 1  ;;  %v1570_v13 = vrot.slane %v1569_v6, 2  ;;  %v2517_v12 = vadd.f32 %v1537_v49, %v1536_v35 }
 0x122   :  { %v2519_v5 = vadd.f32 %v1544_v52, %v1543_v37  ;;  %v1577_v54 = vrot.slane %v1576_v11, 2  ;;  %1863 = vrcp.f32 %v2506_v19  ;;  %v2524_v1 = vadd.f32 %v1500_v36, %v1499_v42 }
 0x123   :  { %v2522_v62 = vpop.eup %1859  ;;  %v2526_v26 = vadd.f32 %v1551_v28, %v1550_v9  ;;  %v2528_v15 = vadd.f32 %v1558_v21, %v1557_v53  ;;  %v1592_v14 = vand.u32 2147483648, %v2499_v56  ;;  %v2531_v0 = vadd.f32 %v1507_v7, %v1506_v38 }
 0x124   :  { %v1582_v16 = vmul.f32 %v2522_v62, %v2499_v56  ;;  %v1606_v18 = vand.u32 2147483648, %v2501_v63  ;;  %1865 = vrcp.f32 %v2508_v10  ;;  %v2537_v8 = vadd.f32 %v1565_v41, %v1564_v39 }
 0x125   :  { %v2539_v59 = vadd.f32 %v1570_v13, %v1569_v6  ;;  %vm1586_vm2 = vweird.f32 %v2499_v56  ;;  %v1590_v22 = vand.u32 2147483647, %v2499_v56  ;;  %v2545_v33 = vadd.f32 %v1577_v54, %v1576_v11 }
 0x126   :  { %v2543_v32 = vpop.eup %1861  ;;  %v1583_v43 = vsub.f32 1.0, %v1582_v16  ;;  %v1620_v45 = vand.u32 2147483648, %v2506_v19  ;;  %1867 = vrcp.f32 %v2510_v17  ;;  %v2549_v48 = vor.u32 1.1754944e-38, %v1592_v14 }
 0x127   :  { %v1596_v46 = vmul.f32 %v2543_v32, %v2501_v63  ;;  %vm1600_vm3 = vweird.f32 %v2501_v63  ;;  %v1604_v25 = vand.u32 2147483647, %v2501_v63  ;;  %vm1587_vm4 = vweird.f32 %v2522_v62 }
 0x128   :  { %v2555_v44 = vpop.eup %1863  ;;  %v1584_v27 = vmul.f32 %v2522_v62, %v1583_v43  ;;  %v1607_v31 = vor.u32 1.1754944e-38, %v1606_v18  ;;  %vm1614_vm5 = vweird.f32 %v2506_v19  ;;  %v1618_v51 = vand.u32 2147483647, %v2506_v19  ;;  %vm2602_vm12 = vmor %vm1586_vm2, %vm1587_vm4 }
 0x129   :  { %v1597_v23 = vsub.f32 1.0, %v1596_v46  ;;  %v1610_v3 = vmul.f32 %v2555_v44, %v2506_v19  ;;  %v1632_v58 = vand.u32 2147483647, %v2508_v10  ;;  %v1634_v57 = vand.u32 2147483648, %v2508_v10 }
 0x12a   :  { %v2565_v40 = vpop.eup %1865  ;;  %v1572_v61 = vrot.slane %v2539_v59, 1  ;;  %v1579_v2 = vrot.slane %v2545_v33, 1  ;;  %v1621_v35 = vor.u32 1.1754944e-38, %v1620_v45  ;;  %1869 = vrcp.f32 %v2513_v50 }
 0x12b   :  { %v1585_v34 = vadd.f32 %v2522_v62, %v1584_v27  ;;  %vm2571_vm6 = vcmp.eq.f32.partialorder %v1590_v22, 8.507059e+37  ;;  %v1598_v9 = vmul.f32 %v2543_v32, %v1597_v23  ;;  %vm2576_vm7 = vcmp.eq.f32.partialorder %v1604_v25, 8.507059e+37 }
 0x12c   :  { %v1611_v53 = vsub.f32 1.0, %v1610_v3  ;;  %v1624_v30 = vmul.f32 %v2565_v40, %v2508_v10  ;;  %v2582_v60 = vpop.eup %1867  ;;  %vm1601_vm8 = vweird.f32 %v2543_v32  ;;  %vm2585_vm9 = vcmp.eq.f32.partialorder %v1618_v51, 8.507059e+37 }
 0x12d   :  { %vm1628_vm10 = vweird.f32 %v2508_v10  ;;  %v1646_v20 = vand.u32 2147483647, %v2510_v17  ;;  %v1648_v38 = vand.u32 2147483648, %v2510_v17  ;;  %v1599_v24 = vadd.f32 %v2543_v32, %v1598_v9  ;;  %vm2622_vm1 = vmor %vm1600_vm3, %vm1601_vm8 }
 0x12e   :  { %v1612_v39 = vmul.f32 %v2555_v44, %v1611_v53  ;;  %v1625_v55 = vsub.f32 1.0, %v1624_v30  ;;  %vm2594_vm11 = vcmp.eq.f32.partialorder %v1632_v58, 8.507059e+37  ;;  %v1635_v49 = vor.u32 1.1754944e-38, %v1634_v57 }
 0x12f   :  { %vm1615_vm13 = vweird.f32 %v2555_v44  ;;  %vm1629_vm14 = vweird.f32 %v2565_v40  ;;  %v1638_v28 = vmul.f32 %v2582_v60, %v2510_v17  ;;  %vm1642_vm15 = vweird.f32 %v2510_v17 }
 0x130   :  { %v1589_v36 = vsel %vm2602_vm12, %v2522_v62, %v1585_v34  ;;  %v1613_v21 = vadd.f32 %v2555_v44, %v1612_v39  ;;  %v1626_v56 = vmul.f32 %v2565_v40, %v1625_v55  ;;  %vm1656_vm0 = vweird.f32 %v2513_v50  ;;  %v1870_v6 = vpop.eup %1869  ;;  %vm2638_vm3 = vmor %vm1614_vm5, %vm1615_vm13 }
 0x131   :  { %1871 = vrcp.f32 %v2524_v1  ;;  %v1639_v7 = vsub.f32 1.0, %v1638_v28  ;;  %vm2626_vm2 = vcmp.eq.f32.partialorder %v1646_v20, 8.507059e+37  ;;  %v1649_v13 = vor.u32 1.1754944e-38, %v1648_v38  ;;  %vm2652_vm4 = vmor %vm1628_vm10, %vm1629_vm14 }
 0x132   :  { %v1660_v54 = vand.u32 2147483647, %v2513_v50  ;;  %v1603_v62 = vsel %vm2622_vm1, %v2543_v32, %v1599_v24  ;;  %v1627_v14 = vadd.f32 %v2565_v40, %v1626_v56  ;;  %v1652_v16 = vmul.f32 %v1870_v6, %v2513_v50 }
 0x133   :  { %v1662_v18 = vand.u32 2147483648, %v2513_v50  ;;  %v1617_v22 = vsel %vm2638_vm3, %v2555_v44, %v1613_v21  ;;  %v1640_v32 = vmul.f32 %v2582_v60, %v1639_v7  ;;  %vm1643_vm5 = vweird.f32 %v2582_v60 }
 0x134   :  { %v1674_v43 = vand.u32 2147483647, %v2524_v1  ;;  %v1631_v45 = vsel %vm2652_vm4, %v2565_v40, %v1627_v14  ;;  %v1653_v46 = vsub.f32 1.0, %v1652_v16  ;;  %v1676_v25 = vand.u32 2147483648, %v2524_v1  ;;  %vm2678_vm10 = vmor %vm1642_vm15, %vm1643_vm5 }
 0x135   :  { %1873 = vrcp.f32 %v2531_v0  ;;  %v1594_v10 = vsel %vm2571_vm6, %v2549_v48, %v1589_v36  ;;  %v1608_v44 = vsel %vm2576_vm7, %v1607_v31, %v1603_v62  ;;  %v1641_v27 = vadd.f32 %v2582_v60, %v1640_v32 }
 0x136   :  { %vm2670_vm8 = vcmp.eq.f32.partialorder %v1660_v54, 8.507059e+37  ;;  %v1622_v3 = vsel %vm2585_vm9, %v1621_v35, %v1617_v22  ;;  %v1654_v48 = vmul.f32 %v1870_v6, %v1653_v46  ;;  %vm1657_vm6 = vweird.f32 %v1870_v6 }
 0x137   :  { %v1872_v23 = vpop.eup %1871  ;;  %v1663_v57 = vor.u32 1.1754944e-38, %v1662_v18  ;;  %v1636_v31 = vsel %vm2594_vm11, %v1635_v49, %v1631_v45  ;;  %v1645_v40 = vsel %vm2678_vm10, %v2582_v60, %v1641_v27  ;;  %vm1670_vm7 = vweird.f32 %v2524_v1  ;;  %vm1658_vm12 = vmor %vm1656_vm0, %vm1657_vm6 }
 0x138   :  { %v1666_v34 = vmul.f32 %v1872_v23, %v2524_v1  ;;  %v1655_v35 = vadd.f32 %v1870_v6, %v1654_v48  ;;  %vm2689_vm9 = vcmp.eq.f32.partialorder %v1674_v43, 8.507059e+37  ;;  %v1677_v37 = vor.u32 1.1754944e-38, %v1676_v25 }
 0x139   :  { %v1693_v9 = vmul.f32 %v1594_v10, %v2515_v4  ;;  %v1688_v53 = vand.u32 2147483647, %v2531_v0  ;;  %v1694_v30 = vmul.f32 %v1608_v44, %v2517_v12  ;;  %v1695_v60 = vmul.f32 %v1622_v3, %v2519_v5 }
 0x13a   :  { %v1667_v42 = vsub.f32 1.0, %v1666_v34  ;;  %v1650_v20 = vsel %vm2626_vm2, %v1649_v13, %v1645_v40  ;;  %v1659_v38 = vsel %vm1658_vm12, %v1870_v6, %v1655_v35  ;;  %vm1729_vm11 = vcmask 1041409  }
 0x13b   :  { %v1874_v29 = vpop.eup %1873  ;;  %vm1731_vm13 = vcmask 1042434   ;;  %vm1671_vm14 = vweird.f32 %v1872_v23  ;;  %vm1733_vm15 = vcmask 1043459   ;;  %v1664_v50 = vsel %vm2670_vm8, %v1663_v57, %v1659_v38 }
 0x13c   :  { %v1668_v24 = vmul.f32 %v1872_v23, %v1667_v42  ;;  %v1680_v4 = vmul.f32 %v1874_v29, %v2531_v0  ;;  %v1696_v39 = vmul.f32 %v1636_v31, %v2526_v26  ;;  %v1730_v12 = vsel %vm1729_vm11, %v1694_v30, %v1693_v9  ;;  %vm1672_vm1 = vmor %vm1670_vm7, %vm1671_vm14 }
 0x13d   :  { %vm1735_vm0 = vcmask 1044484   ;;  %v1697_v47 = vmul.f32 %v1650_v20, %v2528_v15  ;;  %v1732_v49 = vsel %vm1731_vm13, %v1695_v60, %v1730_v12  ;;  %vm1685_vm2 = vweird.f32 %v1874_v29 }
 0x13e   :  { %v1669_v5 = vadd.f32 %v1872_v23, %v1668_v24  ;;  %v1681_v55 = vsub.f32 1.0, %v1680_v4  ;;  %v1690_v52 = vand.u32 2147483648, %v2531_v0  ;;  %v1734_v28 = vsel %vm1733_vm15, %v1696_v39, %v1732_v49 }
 0x13f   :  { %vm1737_vm3 = vcmask 1045509   ;;  %v1698_v56 = vmul.f32 %v1664_v50, %v2537_v8  ;;  %v1736_v26 = vsel %vm1735_vm0, %v1697_v47, %v1734_v28  ;;  %v1573_v6 = vadd.f32 %v1572_v61, %v2539_v59 }
 0x140   :  { %v1673_v36 = vsel %vm1672_vm1, %v1872_v23, %v1669_v5  ;;  %v1682_v21 = vmul.f32 %v1874_v29, %v1681_v55  ;;  %vm1684_vm4 = vweird.f32 %v2531_v0  ;;  %vm1739_vm5 = vcmask 1046534   ;;  %v1826_v0 = vld [vmem:[%s2728_s3] ss:$0 sm:$0xff] }
 0x141   :  { %v1678_v15 = vsel %vm2689_vm9, %v1677_v37, %v1673_v36  ;;  %v1738_v1 = vsel %vm1737_vm3, %v1698_v56, %v1736_v26  ;;  %vm1686_vm8 = vmor %vm1684_vm4, %vm1685_vm2  ;;  %v1691_v7 = vor.u32 1.1754944e-38, %v1690_v52  ;;  %v1580_v8 = vadd.f32 %v1579_v2, %v2545_v33 }
 0x142   :  { %v1683_v11 = vadd.f32 %v1874_v29, %v1682_v21  ;;  %v1699_v41 = vmul.f32 %v1678_v15, %v1573_v6  ;;  %vm1689_vm10 = vcmp.eq.f32.partialorder %v1688_v53, 8.507059e+37  ;;  %vm1741_vm6 = vcmask 1047559  }
 0x144   :  { %v1687_v13 = vsel %vm1686_vm8, %v1874_v29, %v1683_v11  ;;  %v1740_v62 = vsel %vm1739_vm5, %v1699_v41, %v1738_v1 }
 0x145   :  { %v1692_v54 = vsel %vm1689_vm10, %v1691_v7, %v1687_v13 }
 0x146   :  { %v1700_v59 = vmul.f32 %v1692_v54, %v1580_v8 }
 0x148   :  { %v1742_v61 = vsel %vm1741_vm6, %v1700_v59, %v1740_v62 }
 0x149   :  { %1760 = vmatmul.f32.vlgmr.msra.gmra.mxu1 %v1742_v61 }
 0x1c6   :  { %v1761_v63 = vpop.f32.mrf.mxu1 }
 0x1c7   :  { %v1762_v33 = vadd.f32 %v1826_v0, %v1761_v63 }
 0x1c9   :  { %1764 = vst [vmem:[#allocation8] sm:$0xff] %v1762_v33 }
 0x1ca   :  { %1775 = dma.vmem_to_hbm [thread:$0]  %s1771_s8, 128, %s1773_s11, [#allocation4]  }
 0x1cb   :  { %1975 = dma.done.wait [#allocation4], 128  }
 0x1cc   :  { %1976 = vsyncadd [#allocation4], 4294967168 }
 0x1cd   :  { %1780 = vsyncpa [#allocation3], 1 }
 0x1ce   :  { %1781 = vsyncpa [#allocation6], 1 }
 0x1cf   :  { %1782 = vsyncpa [#allocation4], 1 }

</bundles_post_ra>
